<compile_context>
chip_gen: v7x
topology: tpu7x:2x2x1
jax: 0.10.0
libtpu: 0.0.40
codegen_flags: <defaults>
</compile_context>

<pallas_src>
import functools
import math

import jax
import jax.numpy as jnp
from jax.experimental import pallas as pl
from jax.experimental.pallas import tpu as pltpu


_VMEM = pl.BlockSpec(memory_space=pltpu.MemorySpace.VMEM)


# ---------------------------------------------------------------------------
# Pallas kernels
# ---------------------------------------------------------------------------

def _conv_relu_pool_kernel(p_ref, w_ref, b_ref, o_ref):
    """Fused conv (as matmul) + bias + ReLU + 2x2 max-pool.

    p_ref: [4, Mp, K] -- patches grouped by pool offset d = 2*dy + dx,
                         rows within a group ordered (n, ph, pw).
    w_ref: [K, C]      b_ref: [1, C]
    o_ref: [Mp, C]     (== NHWC [n, ph, pw, c] flattened over rows)
    """
    w = w_ref[...].astype(jnp.bfloat16)
    b = b_ref[...]

    def branch(d):
        acc = jnp.dot(p_ref[d].astype(jnp.bfloat16), w,
                      preferred_element_type=jnp.float32)
        return jnp.maximum(acc + b, 0.0)

    # ReLU and max commute (both monotone), so max-of-ReLU == ReLU-of-max.
    o_ref[...] = jnp.maximum(jnp.maximum(branch(0), branch(1)),
                             jnp.maximum(branch(2), branch(3)))


def _head_kernel(f_ref, w3_ref, b3_ref, w4_ref, b4_ref, w5_ref, b5_ref,
                 wa1_ref, wa2_ref, ba_ref, wb_ref, bb_ref, wc_ref, bc_ref,
                 x1_ref, x2_ref, res_ref, *, half):
    """Whole FC tail in one kernel.

    f_ref: [2B, 128] flattened conv2 features (NHWC order).
    Outputs: x1_ref [B,10], x2_ref [B,10] (softmax probs), res_ref [B,1].
    """
    f = f_ref[...]
    # conv3 (2x2 conv on 2x2 input == linear 128->120) + ReLU
    h = jnp.maximum(jnp.dot(f, w3_ref[...],
                            preferred_element_type=jnp.float32) + b3_ref[...], 0.0)
    # fc1 (120->84) + ReLU
    h = jnp.maximum(jnp.dot(h, w4_ref[...],
                            preferred_element_type=jnp.float32) + b4_ref[...], 0.0)
    # BatchNorm1d(84) folded into fc2 weight; fc2 (84->10) + softmax(axis=1)
    logits = jnp.dot(h, w5_ref[...],
                     preferred_element_type=jnp.float32) + b5_ref[...]
    m = jnp.max(logits, axis=1, keepdims=True)
    e = jnp.exp(logits - m)
    probs = e * pl.reciprocal(jnp.sum(e, axis=1, keepdims=True), approx=True)

    x1 = probs[:half]          # branch 0 (first B rows of the batched pass)
    x2 = probs[half:]          # branch 1
    x1_ref[...] = x1
    x2_ref[...] = x2

    # fcA (20->200): concat([x1,x2],1) @ Wa == x1 @ Wa[:10] + x2 @ Wa[10:]
    h2 = jnp.maximum(
        jnp.dot(x1, wa1_ref[...], preferred_element_type=jnp.float32)
        + jnp.dot(x2, wa2_ref[...], preferred_element_type=jnp.float32)
        + ba_ref[...], 0.0)
    # Dropout(p=0.7): identity in eval mode
    # fcB (200->84) + ReLU
    h2 = jnp.maximum(jnp.dot(h2, wb_ref[...],
                             preferred_element_type=jnp.float32) + bb_ref[...], 0.0)
    # Dropout(p=0.7): identity in eval mode
    # fcC (84->1) + numerically stable sigmoid (EUP exp + approx reciprocal)
    z = jnp.dot(h2, wc_ref[...], preferred_element_type=jnp.float32) + bc_ref[...]
    t = jnp.exp(-jnp.abs(z))
    r = pl.reciprocal(1.0 + t, approx=True)
    res_ref[...] = jnp.where(z >= 0.0, r, t * r)


# ---------------------------------------------------------------------------
# Glue: channels-last im2col with pool-group ordering (plain JAX)
# ---------------------------------------------------------------------------

def _im2col_pool_groups(x, kh, kw):
    """x: NHWC [N,H,W,C] -> patches [4, N*(oh//2)*(ow//2), kh*kw*C].

    Group index d = 2*dy + dx is the position inside the 2x2 pool window;
    rows inside a group are ordered (n, ph, pw).
    """
    N, H, W, C = x.shape
    oh, ow = H - kh + 1, W - kw + 1
    cols = [x[:, i:i + oh, j:j + ow, :] for i in range(kh) for j in range(kw)]
    p = jnp.concatenate(cols, axis=-1)                   # [N, oh, ow, kh*kw*C]
    K = kh * kw * C
    p = p.reshape(N, oh // 2, 2, ow // 2, 2, K)          # [N, ph, dy, pw, dx, K]
    p = p.transpose(2, 4, 0, 1, 3, 5)                    # [dy, dx, N, ph, pw, K]
    return p.reshape(4, N * (oh // 2) * (ow // 2), K)


# ---------------------------------------------------------------------------
# Pallas wrappers
# ---------------------------------------------------------------------------

def conv_relu_pool(x_nhwc, w, b, kh, kw):
    """Conv(valid) + bias + ReLU + MaxPool2d(2,2) on NHWC input."""
    N, H, W, _ = x_nhwc.shape
    oh, ow = H - kh + 1, W - kw + 1
    ph, pw = oh // 2, ow // 2
    c_out = w.shape[1]
    patches = _im2col_pool_groups(x_nhwc, kh, kw)        # [4, N*ph*pw, K]
    out = pl.pallas_call(
        _conv_relu_pool_kernel,
        out_shape=jax.ShapeDtypeStruct((N * ph * pw, c_out), jnp.float32),
        in_specs=[_VMEM, _VMEM, _VMEM],
        out_specs=_VMEM,
    )(patches, w, b)
    return out.reshape(N, ph, pw, c_out)                 # NHWC


def fc_head(feat, p, half):
    """feat: [2B, 128] -> (x1 [B,10], x2 [B,10], res [B,1])."""
    kernel = functools.partial(_head_kernel, half=half)
    return pl.pallas_call(
        kernel,
        out_shape=(jax.ShapeDtypeStruct((half, 10), jnp.float32),
                   jax.ShapeDtypeStruct((half, 10), jnp.float32),
                   jax.ShapeDtypeStruct((half, 1), jnp.float32)),
        in_specs=[_VMEM] * 14,
        out_specs=(_VMEM, _VMEM, _VMEM),
    )(feat, p["conv3_w"], p["conv3_b"], p["fc1_w"], p["fc1_b"],
      p["fc2_w"], p["fc2_b"], p["fcA_w1"], p["fcA_w2"], p["fcA_b"],
      p["fcB_w"], p["fcB_b"], p["fcC_w"], p["fcC_b"])


# ---------------------------------------------------------------------------
# Parameters (PyTorch-style U(-1/sqrt(fan_in), 1/sqrt(fan_in)); biases [1,N])
# ---------------------------------------------------------------------------

def _lin_init(key, fan_in, fan_out):
    k1, k2 = jax.random.split(key)
    bound = 1.0 / math.sqrt(fan_in)
    w = jax.random.uniform(k1, (fan_in, fan_out), jnp.float32, -bound, bound)
    b = jax.random.uniform(k2, (1, fan_out), jnp.float32, -bound, bound)
    return w, b


def init_params(key):
    keys = jax.random.split(key, 8)
    p = {}
    # Pre_WSAL_LeNet5 conv stack (weights stored directly as [K, out_c],
    # K ordered (kh, kw, c_in) to match the channels-last im2col).
    p["conv1_w"], p["conv1_b"] = _lin_init(keys[0], 1 * 3 * 3, 16)
    p["conv2_w"], p["conv2_b"] = _lin_init(keys[1], 16 * 3 * 3, 32)
    p["conv3_w"], p["conv3_b"] = _lin_init(keys[2], 32 * 2 * 2, 120)
    # Pre_WSAL_LeNet5 linear stack
    p["fc1_w"], p["fc1_b"] = _lin_init(keys[3], 120, 84)
    fc2_w, fc2_b = _lin_init(keys[4], 84, 10)
    # BatchNorm1d(84) eval mode with default running stats -> uniform scale,
    # folded into fc2 weight.  Only valid for default (mean=0, var=1, affine
    # identity) stats; with trained BN parameters fold per-channel instead.
    bn_scale = 1.0 / math.sqrt(1.0 + 1e-5)
    p["fc2_w"] = fc2_w * bn_scale
    p["fc2_b"] = fc2_b
    # WSAL_LeNet5 fullyConnected stack; fcA weight pre-split so the in-kernel
    # concat([x1,x2],1) @ Wa becomes x1 @ Wa1 + x2 @ Wa2.
    fcA_w, p["fcA_b"] = _lin_init(keys[5], 20, 200)
    p["fcA_w1"] = fcA_w[:10]
    p["fcA_w2"] = fcA_w[10:]
    p["fcB_w"], p["fcB_b"] = _lin_init(keys[6], 200, 84)
    p["fcC_w"], p["fcC_b"] = _lin_init(keys[7], 84, 1)
    return p


# ---------------------------------------------------------------------------
# Forward pass (3 pallas_call launches total)
# ---------------------------------------------------------------------------

@jax.jit
def wsal_forward(x, p):
    """x: [B, 2, 14, 14] -> (x1:[B,10], x2:[B,10], res:[B,1])."""
    B = x.shape[0]
    # Run both shared-weight branches as one batched pass, channels-last.
    xb = jnp.concatenate([x[:, 0], x[:, 1]], axis=0)[..., None]   # [2B,14,14,1]
    y = conv_relu_pool(xb, p["conv1_w"], p["conv1_b"], 3, 3)      # [2B,6,6,16]
    y = conv_relu_pool(y, p["conv2_w"], p["conv2_b"], 3, 3)       # [2B,2,2,32]
    feat = y.reshape(2 * B, 2 * 2 * 32)                           # [2B,128]
    return fc_head(feat, p, B)


# ---------------------------------------------------------------------------

if __name__ == "__main__":
    key = jax.random.PRNGKey(0)
    k_param, k_input = jax.random.split(key)
    params = init_params(k_param)

    # Pair of 14x14 single-channel images per example; the 14x14 spatial size
    # is forced by the conv stack + view(-1, 120).
    x = jax.random.normal(k_input, (2, 2, 14, 14), dtype=jnp.float32)

    x1, x2, res = wsal_forward(x, params)
    jax.block_until_ready((x1, x2, res))

    assert x1.shape == (2, 10) and x2.shape == (2, 10) and res.shape == (2, 1)
    assert bool(jnp.all(jnp.isfinite(x1))) and bool(jnp.all(jnp.isfinite(x2)))
    assert bool(jnp.all(jnp.isfinite(res)))
    print("KERNEL_OK")
</pallas_src>

<mosaic_0001>
module attributes {stable_mosaic.version = 11 : i64} {
  func.func @_conv_relu_pool_kernel(%arg0: memref<4x144x9xf32, #tpu.memory_space<vmem>>, %arg1: memref<9x16xf32, #tpu.memory_space<vmem>>, %arg2: memref<1x16xf32, #tpu.memory_space<vmem>>, %arg3: memref<144x16xf32, #tpu.memory_space<vmem>>) attributes {dimension_semantics = [], scalar_prefetch = 0 : i64, scratch_operands = 0 : i64, tpu.core_type = #tpu.core_type<tc>} {
    %c0 = arith.constant 0 : index
    %c0_0 = arith.constant 0 : index
    %0 = vector.load %arg1[%c0, %c0_0] : memref<9x16xf32, #tpu.memory_space<vmem>>, vector<9x16xf32>
    %1 = arith.truncf %0 : vector<9x16xf32> to vector<9x16xbf16>
    %c0_1 = arith.constant 0 : index
    %c0_2 = arith.constant 0 : index
    %2 = vector.load %arg2[%c0_1, %c0_2] : memref<1x16xf32, #tpu.memory_space<vmem>>, vector<1x16xf32>
    %c0_3 = arith.constant 0 : index
    %c0_4 = arith.constant 0 : index
    %c0_5 = arith.constant 0 : index
    %3 = vector.load %arg0[%c0_3, %c0_4, %c0_5] : memref<4x144x9xf32, #tpu.memory_space<vmem>>, vector<1x144x9xf32>
    %4 = vector.shape_cast %3 : vector<1x144x9xf32> to vector<144x9xf32>
    %5 = arith.truncf %4 : vector<144x9xf32> to vector<144x9xbf16>
    %cst = arith.constant dense<0.000000e+00> : vector<144x16xf32>
    %6 = tpu.matmul %5, %1, %cst {dimension_numbers = #tpu.dot_dimension_numbers<[1], [0], [0], [1], [0, 0, 1, 1], [], []>} : vector<144x9xbf16>, vector<9x16xbf16>, vector<144x16xf32> -> vector<144x16xf32>
    %7 = vector.broadcast %2 : vector<1x16xf32> to vector<144x16xf32>
    %8 = arith.addf %6, %7 : vector<144x16xf32>
    %cst_6 = arith.constant 0.000000e+00 : f32
    %9 = vector.broadcast %cst_6 : f32 to vector<144x16xf32>
    %10 = arith.maximumf %8, %9 : vector<144x16xf32>
    %c1 = arith.constant 1 : index
    %c0_7 = arith.constant 0 : index
    %c0_8 = arith.constant 0 : index
    %11 = vector.load %arg0[%c1, %c0_7, %c0_8] : memref<4x144x9xf32, #tpu.memory_space<vmem>>, vector<1x144x9xf32>
    %12 = vector.shape_cast %11 : vector<1x144x9xf32> to vector<144x9xf32>
    %13 = arith.truncf %12 : vector<144x9xf32> to vector<144x9xbf16>
    %cst_9 = arith.constant dense<0.000000e+00> : vector<144x16xf32>
    %14 = tpu.matmul %13, %1, %cst_9 {dimension_numbers = #tpu.dot_dimension_numbers<[1], [0], [0], [1], [0, 0, 1, 1], [], []>} : vector<144x9xbf16>, vector<9x16xbf16>, vector<144x16xf32> -> vector<144x16xf32>
    %15 = vector.broadcast %2 : vector<1x16xf32> to vector<144x16xf32>
    %16 = arith.addf %14, %15 : vector<144x16xf32>
    %cst_10 = arith.constant 0.000000e+00 : f32
    %17 = vector.broadcast %cst_10 : f32 to vector<144x16xf32>
    %18 = arith.maximumf %16, %17 : vector<144x16xf32>
    %19 = arith.maximumf %10, %18 : vector<144x16xf32>
    %c2 = arith.constant 2 : index
    %c0_11 = arith.constant 0 : index
    %c0_12 = arith.constant 0 : index
    %20 = vector.load %arg0[%c2, %c0_11, %c0_12] : memref<4x144x9xf32, #tpu.memory_space<vmem>>, vector<1x144x9xf32>
    %21 = vector.shape_cast %20 : vector<1x144x9xf32> to vector<144x9xf32>
    %22 = arith.truncf %21 : vector<144x9xf32> to vector<144x9xbf16>
    %cst_13 = arith.constant dense<0.000000e+00> : vector<144x16xf32>
    %23 = tpu.matmul %22, %1, %cst_13 {dimension_numbers = #tpu.dot_dimension_numbers<[1], [0], [0], [1], [0, 0, 1, 1], [], []>} : vector<144x9xbf16>, vector<9x16xbf16>, vector<144x16xf32> -> vector<144x16xf32>
    %24 = vector.broadcast %2 : vector<1x16xf32> to vector<144x16xf32>
    %25 = arith.addf %23, %24 : vector<144x16xf32>
    %cst_14 = arith.constant 0.000000e+00 : f32
    %26 = vector.broadcast %cst_14 : f32 to vector<144x16xf32>
    %27 = arith.maximumf %25, %26 : vector<144x16xf32>
    %c3 = arith.constant 3 : index
    %c0_15 = arith.constant 0 : index
    %c0_16 = arith.constant 0 : index
    %28 = vector.load %arg0[%c3, %c0_15, %c0_16] : memref<4x144x9xf32, #tpu.memory_space<vmem>>, vector<1x144x9xf32>
    %29 = vector.shape_cast %28 : vector<1x144x9xf32> to vector<144x9xf32>
    %30 = arith.truncf %29 : vector<144x9xf32> to vector<144x9xbf16>
    %cst_17 = arith.constant dense<0.000000e+00> : vector<144x16xf32>
    %31 = tpu.matmul %30, %1, %cst_17 {dimension_numbers = #tpu.dot_dimension_numbers<[1], [0], [0], [1], [0, 0, 1, 1], [], []>} : vector<144x9xbf16>, vector<9x16xbf16>, vector<144x16xf32> -> vector<144x16xf32>
    %32 = vector.broadcast %2 : vector<1x16xf32> to vector<144x16xf32>
    %33 = arith.addf %31, %32 : vector<144x16xf32>
    %cst_18 = arith.constant 0.000000e+00 : f32
    %34 = vector.broadcast %cst_18 : f32 to vector<144x16xf32>
    %35 = arith.maximumf %33, %34 : vector<144x16xf32>
    %36 = arith.maximumf %27, %35 : vector<144x16xf32>
    %37 = arith.maximumf %19, %36 : vector<144x16xf32>
    %c0_19 = arith.constant 0 : index
    %c0_20 = arith.constant 0 : index
    %38 = vector.load %arg3[%c0_19, %c0_20] : memref<144x16xf32, #tpu.memory_space<vmem>>, vector<144x16xf32>
    tpu.vector_store %arg3[%c0_19, %c0_20], %37 {strides = array<i32>} : memref<144x16xf32, #tpu.memory_space<vmem>>, vector<144x16xf32>,
    return
  }
}

module attributes {stable_mosaic.version = 11 : i64} {
  func.func @_conv_relu_pool_kernel(%arg0: memref<4x16x144xf32, #tpu.memory_space<vmem>>, %arg1: memref<144x32xf32, #tpu.memory_space<vmem>>, %arg2: memref<1x32xf32, #tpu.memory_space<vmem>>, %arg3: memref<16x32xf32, #tpu.memory_space<vmem>>) attributes {dimension_semantics = [], scalar_prefetch = 0 : i64, scratch_operands = 0 : i64, tpu.core_type = #tpu.core_type<tc>} {
    %c0 = arith.constant 0 : index
    %c0_0 = arith.constant 0 : index
    %0 = vector.load %arg1[%c0, %c0_0] : memref<144x32xf32, #tpu.memory_space<vmem>>, vector<144x32xf32>
    %1 = arith.truncf %0 : vector<144x32xf32> to vector<144x32xbf16>
    %c0_1 = arith.constant 0 : index
    %c0_2 = arith.constant 0 : index
    %2 = vector.load %arg2[%c0_1, %c0_2] : memref<1x32xf32, #tpu.memory_space<vmem>>, vector<1x32xf32>
    %c0_3 = arith.constant 0 : index
    %c0_4 = arith.constant 0 : index
    %c0_5 = arith.constant 0 : index
    %3 = vector.load %arg0[%c0_3, %c0_4, %c0_5] : memref<4x16x144xf32, #tpu.memory_space<vmem>>, vector<1x16x144xf32>
    %4 = vector.shape_cast %3 : vector<1x16x144xf32> to vector<16x144xf32>
    %5 = arith.truncf %4 : vector<16x144xf32> to vector<16x144xbf16>
    %cst = arith.constant dense<0.000000e+00> : vector<16x32xf32>
    %6 = tpu.matmul %5, %1, %cst {dimension_numbers = #tpu.dot_dimension_numbers<[1], [0], [0], [1], [0, 0, 1, 1], [], []>} : vector<16x144xbf16>, vector<144x32xbf16>, vector<16x32xf32> -> vector<16x32xf32>
    %7 = vector.broadcast %2 : vector<1x32xf32> to vector<16x32xf32>
    %8 = arith.addf %6, %7 : vector<16x32xf32>
    %cst_6 = arith.constant 0.000000e+00 : f32
    %9 = vector.broadcast %cst_6 : f32 to vector<16x32xf32>
    %10 = arith.maximumf %8, %9 : vector<16x32xf32>
    %c1 = arith.constant 1 : index
    %c0_7 = arith.constant 0 : index
    %c0_8 = arith.constant 0 : index
    %11 = vector.load %arg0[%c1, %c0_7, %c0_8] : memref<4x16x144xf32, #tpu.memory_space<vmem>>, vector<1x16x144xf32>
    %12 = vector.shape_cast %11 : vector<1x16x144xf32> to vector<16x144xf32>
    %13 = arith.truncf %12 : vector<16x144xf32> to vector<16x144xbf16>
    %cst_9 = arith.constant dense<0.000000e+00> : vector<16x32xf32>
    %14 = tpu.matmul %13, %1, %cst_9 {dimension_numbers = #tpu.dot_dimension_numbers<[1], [0], [0], [1], [0, 0, 1, 1], [], []>} : vector<16x144xbf16>, vector<144x32xbf16>, vector<16x32xf32> -> vector<16x32xf32>
    %15 = vector.broadcast %2 : vector<1x32xf32> to vector<16x32xf32>
    %16 = arith.addf %14, %15 : vector<16x32xf32>
    %cst_10 = arith.constant 0.000000e+00 : f32
    %17 = vector.broadcast %cst_10 : f32 to vector<16x32xf32>
    %18 = arith.maximumf %16, %17 : vector<16x32xf32>
    %19 = arith.maximumf %10, %18 : vector<16x32xf32>
    %c2 = arith.constant 2 : index
    %c0_11 = arith.constant 0 : index
    %c0_12 = arith.constant 0 : index
    %20 = vector.load %arg0[%c2, %c0_11, %c0_12] : memref<4x16x144xf32, #tpu.memory_space<vmem>>, vector<1x16x144xf32>
    %21 = vector.shape_cast %20 : vector<1x16x144xf32> to vector<16x144xf32>
    %22 = arith.truncf %21 : vector<16x144xf32> to vector<16x144xbf16>
    %cst_13 = arith.constant dense<0.000000e+00> : vector<16x32xf32>
    %23 = tpu.matmul %22, %1, %cst_13 {dimension_numbers = #tpu.dot_dimension_numbers<[1], [0], [0], [1], [0, 0, 1, 1], [], []>} : vector<16x144xbf16>, vector<144x32xbf16>, vector<16x32xf32> -> vector<16x32xf32>
    %24 = vector.broadcast %2 : vector<1x32xf32> to vector<16x32xf32>
    %25 = arith.addf %23, %24 : vector<16x32xf32>
    %cst_14 = arith.constant 0.000000e+00 : f32
    %26 = vector.broadcast %cst_14 : f32 to vector<16x32xf32>
    %27 = arith.maximumf %25, %26 : vector<16x32xf32>
    %c3 = arith.constant 3 : index
    %c0_15 = arith.constant 0 : index
    %c0_16 = arith.constant 0 : index
    %28 = vector.load %arg0[%c3, %c0_15, %c0_16] : memref<4x16x144xf32, #tpu.memory_space<vmem>>, vector<1x16x144xf32>
    %29 = vector.shape_cast %28 : vector<1x16x144xf32> to vector<16x144xf32>
    %30 = arith.truncf %29 : vector<16x144xf32> to vector<16x144xbf16>
    %cst_17 = arith.constant dense<0.000000e+00> : vector<16x32xf32>
    %31 = tpu.matmul %30, %1, %cst_17 {dimension_numbers = #tpu.dot_dimension_numbers<[1], [0], [0], [1], [0, 0, 1, 1], [], []>} : vector<16x144xbf16>, vector<144x32xbf16>, vector<16x32xf32> -> vector<16x32xf32>
    %32 = vector.broadcast %2 : vector<1x32xf32> to vector<16x32xf32>
    %33 = arith.addf %31, %32 : vector<16x32xf32>
    %cst_18 = arith.constant 0.000000e+00 : f32
    %34 = vector.broadcast %cst_18 : f32 to vector<16x32xf32>
    %35 = arith.maximumf %33, %34 : vector<16x32xf32>
    %36 = arith.maximumf %27, %35 : vector<16x32xf32>
    %37 = arith.maximumf %19, %36 : vector<16x32xf32>
    %c0_19 = arith.constant 0 : index
    %c0_20 = arith.constant 0 : index
    %38 = vector.load %arg3[%c0_19, %c0_20] : memref<16x32xf32, #tpu.memory_space<vmem>>, vector<16x32xf32>
    tpu.vector_store %arg3[%c0_19, %c0_20], %37 {strides = array<i32>} : memref<16x32xf32, #tpu.memory_space<vmem>>, vector<16x32xf32>,
    return
  }
}

module attributes {stable_mosaic.version = 11 : i64} {
  func.func @_head_kernel(%arg0: memref<4x128xf32, #tpu.memory_space<vmem>>, %arg1: memref<128x120xf32, #tpu.memory_space<vmem>>, %arg2: memref<1x120xf32, #tpu.memory_space<vmem>>, %arg3: memref<120x84xf32, #tpu.memory_space<vmem>>, %arg4: memref<1x84xf32, #tpu.memory_space<vmem>>, %arg5: memref<84x10xf32, #tpu.memory_space<vmem>>, %arg6: memref<1x10xf32, #tpu.memory_space<vmem>>, %arg7: memref<10x200xf32, #tpu.memory_space<vmem>>, %arg8: memref<10x200xf32, #tpu.memory_space<vmem>>, %arg9: memref<1x200xf32, #tpu.memory_space<vmem>>, %arg10: memref<200x84xf32, #tpu.memory_space<vmem>>, %arg11: memref<1x84xf32, #tpu.memory_space<vmem>>, %arg12: memref<84x1xf32, #tpu.memory_space<vmem>>, %arg13: memref<1x1xf32, #tpu.memory_space<vmem>>, %arg14: memref<2x10xf32, #tpu.memory_space<vmem>>, %arg15: memref<2x10xf32, #tpu.memory_space<vmem>>, %arg16: memref<2x1xf32, #tpu.memory_space<vmem>>) attributes {dimension_semantics = [], scalar_prefetch = 0 : i64, scratch_operands = 0 : i64, tpu.core_type = #tpu.core_type<tc>} {
    %c0 = arith.constant 0 : index
    %c0_0 = arith.constant 0 : index
    %0 = vector.load %arg0[%c0, %c0_0] : memref<4x128xf32, #tpu.memory_space<vmem>>, vector<4x128xf32>
    %c0_1 = arith.constant 0 : index
    %c0_2 = arith.constant 0 : index
    %1 = vector.load %arg1[%c0_1, %c0_2] : memref<128x120xf32, #tpu.memory_space<vmem>>, vector<128x120xf32>
    %cst = arith.constant dense<0.000000e+00> : vector<4x120xf32>
    %2 = tpu.matmul %0, %1, %cst {dimension_numbers = #tpu.dot_dimension_numbers<[1], [0], [0], [1], [0, 0, 1, 1], [], []>} : vector<4x128xf32>, vector<128x120xf32>, vector<4x120xf32> -> vector<4x120xf32>
    %c0_3 = arith.constant 0 : index
    %c0_4 = arith.constant 0 : index
    %3 = vector.load %arg2[%c0_3, %c0_4] : memref<1x120xf32, #tpu.memory_space<vmem>>, vector<1x120xf32>
    %4 = vector.broadcast %3 : vector<1x120xf32> to vector<4x120xf32>
    %5 = arith.addf %2, %4 : vector<4x120xf32>
    %cst_5 = arith.constant 0.000000e+00 : f32
    %6 = vector.broadcast %cst_5 : f32 to vector<4x120xf32>
    %7 = arith.maximumf %5, %6 : vector<4x120xf32>
    %c0_6 = arith.constant 0 : index
    %c0_7 = arith.constant 0 : index
    %8 = vector.load %arg3[%c0_6, %c0_7] : memref<120x84xf32, #tpu.memory_space<vmem>>, vector<120x84xf32>
    %cst_8 = arith.constant dense<0.000000e+00> : vector<4x84xf32>
    %9 = tpu.matmul %7, %8, %cst_8 {dimension_numbers = #tpu.dot_dimension_numbers<[1], [0], [0], [1], [0, 0, 1, 1], [], []>} : vector<4x120xf32>, vector<120x84xf32>, vector<4x84xf32> -> vector<4x84xf32>
    %c0_9 = arith.constant 0 : index
    %c0_10 = arith.constant 0 : index
    %10 = vector.load %arg4[%c0_9, %c0_10] : memref<1x84xf32, #tpu.memory_space<vmem>>, vector<1x84xf32>
    %11 = vector.broadcast %10 : vector<1x84xf32> to vector<4x84xf32>
    %12 = arith.addf %9, %11 : vector<4x84xf32>
    %cst_11 = arith.constant 0.000000e+00 : f32
    %13 = vector.broadcast %cst_11 : f32 to vector<4x84xf32>
    %14 = arith.maximumf %12, %13 : vector<4x84xf32>
    %c0_12 = arith.constant 0 : index
    %c0_13 = arith.constant 0 : index
    %15 = vector.load %arg5[%c0_12, %c0_13] : memref<84x10xf32, #tpu.memory_space<vmem>>, vector<84x10xf32>
    %cst_14 = arith.constant dense<0.000000e+00> : vector<4x10xf32>
    %16 = tpu.matmul %14, %15, %cst_14 {dimension_numbers = #tpu.dot_dimension_numbers<[1], [0], [0], [1], [0, 0, 1, 1], [], []>} : vector<4x84xf32>, vector<84x10xf32>, vector<4x10xf32> -> vector<4x10xf32>
    %c0_15 = arith.constant 0 : index
    %c0_16 = arith.constant 0 : index
    %17 = vector.load %arg6[%c0_15, %c0_16] : memref<1x10xf32, #tpu.memory_space<vmem>>, vector<1x10xf32>
    %18 = vector.broadcast %17 : vector<1x10xf32> to vector<4x10xf32>
    %19 = arith.addf %16, %18 : vector<4x10xf32>
    %cst_17 = arith.constant dense<0xFF800000> : vector<4xf32>
    %20 = vector.multi_reduction <maximumf>, %19, %cst_17 [1] : vector<4x10xf32> to vector<4xf32>
    %21 = vector.shape_cast %20 : vector<4xf32> to vector<4x1xf32>
    %22 = vector.broadcast %21 : vector<4x1xf32> to vector<4x10xf32>
    %23 = arith.subf %19, %22 : vector<4x10xf32>
    %24 = math.exp %23 : vector<4x10xf32>
    %cst_18 = arith.constant dense<0.000000e+00> : vector<4xf32>
    %25 = vector.multi_reduction <add>, %24, %cst_18 [1] : vector<4x10xf32> to vector<4xf32>
    %26 = vector.shape_cast %25 : vector<4xf32> to vector<4x1xf32>
    %27 = tpu.reciprocal %26 {approx = true} : vector<4x1xf32> -> vector<4x1xf32>
    %28 = vector.broadcast %27 : vector<4x1xf32> to vector<4x10xf32>
    %29 = arith.mulf %24, %28 : vector<4x10xf32>
    %30 = vector.extract_strided_slice %29 {offsets = [0, 0], sizes = [2, 10], strides = [1, 1]} : vector<4x10xf32> to vector<2x10xf32>
    %31 = vector.extract_strided_slice %29 {offsets = [2, 0], sizes = [2, 10], strides = [1, 1]} : vector<4x10xf32> to vector<2x10xf32>
    %c0_19 = arith.constant 0 : index
    %c0_20 = arith.constant 0 : index
    %32 = vector.load %arg14[%c0_19, %c0_20] : memref<2x10xf32, #tpu.memory_space<vmem>>, vector<2x10xf32>
    tpu.vector_store %arg14[%c0_19, %c0_20], %30 {strides = array<i32>} : memref<2x10xf32, #tpu.memory_space<vmem>>, vector<2x10xf32>,
    %c0_21 = arith.constant 0 : index
    %c0_22 = arith.constant 0 : index
    %33 = vector.load %arg15[%c0_21, %c0_22] : memref<2x10xf32, #tpu.memory_space<vmem>>, vector<2x10xf32>
    tpu.vector_store %arg15[%c0_21, %c0_22], %31 {strides = array<i32>} : memref<2x10xf32, #tpu.memory_space<vmem>>, vector<2x10xf32>,
    %c0_23 = arith.constant 0 : index
    %c0_24 = arith.constant 0 : index
    %34 = vector.load %arg7[%c0_23, %c0_24] : memref<10x200xf32, #tpu.memory_space<vmem>>, vector<10x200xf32>
    %cst_25 = arith.constant dense<0.000000e+00> : vector<2x200xf32>
    %35 = tpu.matmul %30, %34, %cst_25 {dimension_numbers = #tpu.dot_dimension_numbers<[1], [0], [0], [1], [0, 0, 1, 1], [], []>} : vector<2x10xf32>, vector<10x200xf32>, vector<2x200xf32> -> vector<2x200xf32>
    %c0_26 = arith.constant 0 : index
    %c0_27 = arith.constant 0 : index
    %36 = vector.load %arg8[%c0_26, %c0_27] : memref<10x200xf32, #tpu.memory_space<vmem>>, vector<10x200xf32>
    %cst_28 = arith.constant dense<0.000000e+00> : vector<2x200xf32>
    %37 = tpu.matmul %31, %36, %cst_28 {dimension_numbers = #tpu.dot_dimension_numbers<[1], [0], [0], [1], [0, 0, 1, 1], [], []>} : vector<2x10xf32>, vector<10x200xf32>, vector<2x200xf32> -> vector<2x200xf32>
    %38 = arith.addf %35, %37 : vector<2x200xf32>
    %c0_29 = arith.constant 0 : index
    %c0_30 = arith.constant 0 : index
    %39 = vector.load %arg9[%c0_29, %c0_30] : memref<1x200xf32, #tpu.memory_space<vmem>>, vector<1x200xf32>
    %40 = vector.broadcast %39 : vector<1x200xf32> to vector<2x200xf32>
    %41 = arith.addf %38, %40 : vector<2x200xf32>
    %cst_31 = arith.constant 0.000000e+00 : f32
    %42 = vector.broadcast %cst_31 : f32 to vector<2x200xf32>
    %43 = arith.maximumf %41, %42 : vector<2x200xf32>
    %c0_32 = arith.constant 0 : index
    %c0_33 = arith.constant 0 : index
    %44 = vector.load %arg10[%c0_32, %c0_33] : memref<200x84xf32, #tpu.memory_space<vmem>>, vector<200x84xf32>
    %cst_34 = arith.constant dense<0.000000e+00> : vector<2x84xf32>
    %45 = tpu.matmul %43, %44, %cst_34 {dimension_numbers = #tpu.dot_dimension_numbers<[1], [0], [0], [1], [0, 0, 1, 1], [], []>} : vector<2x200xf32>, vector<200x84xf32>, vector<2x84xf32> -> vector<2x84xf32>
    %c0_35 = arith.constant 0 : index
    %c0_36 = arith.constant 0 : index
    %46 = vector.load %arg11[%c0_35, %c0_36] : memref<1x84xf32, #tpu.memory_space<vmem>>, vector<1x84xf32>
    %47 = vector.broadcast %46 : vector<1x84xf32> to vector<2x84xf32>
    %48 = arith.addf %45, %47 : vector<2x84xf32>
    %cst_37 = arith.constant 0.000000e+00 : f32
    %49 = vector.broadcast %cst_37 : f32 to vector<2x84xf32>
    %50 = arith.maximumf %48, %49 : vector<2x84xf32>
    %c0_38 = arith.constant 0 : index
    %c0_39 = arith.constant 0 : index
    %51 = vector.load %arg12[%c0_38, %c0_39] : memref<84x1xf32, #tpu.memory_space<vmem>>, vector<84x1xf32>
    %cst_40 = arith.constant dense<0.000000e+00> : vector<2x1xf32>
    %52 = tpu.matmul %50, %51, %cst_40 {dimension_numbers = #tpu.dot_dimension_numbers<[1], [0], [0], [1], [0, 0, 1, 1], [], []>} : vector<2x84xf32>, vector<84x1xf32>, vector<2x1xf32> -> vector<2x1xf32>
    %c0_41 = arith.constant 0 : index
    %c0_42 = arith.constant 0 : index
    %53 = vector.load %arg13[%c0_41, %c0_42] : memref<1x1xf32, #tpu.memory_space<vmem>>, vector<1x1xf32>
    %54 = vector.broadcast %53 : vector<1x1xf32> to vector<2x1xf32>
    %55 = arith.addf %52, %54 : vector<2x1xf32>
    %56 = math.absf %55 : vector<2x1xf32>
    %cst_43 = arith.constant 0.000000e+00 : f32
    %57 = vector.broadcast %cst_43 : f32 to vector<2x1xf32>
    %58 = arith.subf %57, %56 : vector<2x1xf32>
    %59 = math.exp %58 : vector<2x1xf32>
    %cst_44 = arith.constant 1.000000e+00 : f32
    %60 = vector.broadcast %cst_44 : f32 to vector<2x1xf32>
    %61 = arith.addf %60, %59 : vector<2x1xf32>
    %62 = tpu.reciprocal %61 {approx = true} : vector<2x1xf32> -> vector<2x1xf32>
    %cst_45 = arith.constant 0.000000e+00 : f32
    %63 = vector.broadcast %cst_45 : f32 to vector<2x1xf32>
    %64 = arith.cmpf oge, %55, %63 : vector<2x1xf32>
    %65 = arith.mulf %59, %62 : vector<2x1xf32>
    %66 = arith.select %64, %62, %65 : vector<2x1xi1>, vector<2x1xf32>
    %c0_46 = arith.constant 0 : index
    %c0_47 = arith.constant 0 : index
    %67 = vector.load %arg16[%c0_46, %c0_47] : memref<2x1xf32, #tpu.memory_space<vmem>>, vector<2x1xf32>
    tpu.vector_store %arg16[%c0_46, %c0_47], %66 {strides = array<i32>} : memref<2x1xf32, #tpu.memory_space<vmem>>, vector<2x1xf32>,
    return
  }
}

</mosaic_0001>

<bundles_post_ra>
// kernel: wsal_forward.4
= control target key start
LH: loop header
LB: loop body
LE: loop exit
PB: predicated region body
PF: predicated region fallthrough
CT: control target
= control target key end

     0   :  { %v292_v0 = vmov 0   ;;  %vm55_vm0 = vcmask 130048   ;;  %vm267_vm1 = vcmask 261120   ;;  %s500_s1 = inlined_call_operand.vmem [shape: f32[144,32], index: 1, kind: input, shape index: {}]   ;;  %s501_s0 = inlined_call_operand.vmem [shape: f32[4,16,144], index: 0, kind: input, shape index: {}]   ;;  %s502_s2 = inlined_call_operand.vmem [shape: f32[1,32], index: 2, kind: input, shape index: {}]   ;;  %s503_s3 = inlined_call_operand.vmem [shape: f32[16,32], index: 3, kind: output, shape index: {}]  }
   0x1   :  { %59 = vmatprep.subr.bf16.mxu0 %v292_v0  ;;  %112 = vmatprep.subr.bf16.mxu1 %v292_v0  ;;  %v15_v1 = vld [vmem:[%s500_s1] sm:$0xff]  ;;  %v16_v2 = vld [vmem:[%s500_s1 + $0x8] sm:$0xff]  ;;  %v17_v3 = vld [vmem:[%s500_s1 + $0x10] sm:$0xff] }
   0x2   :  { %v324_v4 = vpack.c.bf16 %v16_v2, %v15_v1  ;;  %v18_v5 = vld [vmem:[%s500_s1 + $0x18] sm:$0xff]  ;;  %v19_v7 = vld [vmem:[%s500_s1 + $0x20] sm:$0xff]  ;;  %v20_v8 = vld [vmem:[%s500_s1 + $0x28] sm:$0xff] }
   0x3   :  { %v331_v6 = vpack.c.bf16 %v18_v5, %v17_v3  ;;  %v44_v9 = vld [vmem:[%s501_s0 + $0x8] sm:$0xff]  ;;  %v46_v10 = vld [vmem:[%s501_s0 + $0x18] sm:$0xff]  ;;  %v352_v12 = vpack.c.bf16 %v20_v8, %v19_v7  ;;  %v21_v15 = vld [vmem:[%s500_s1 + $0x30] sm:$0xff] }
   0x4   :  { %60 = vmatpush1.bf16.msra.mxu0 %v324_v4  ;;  %113 = vmatpush1.bf16.msra.mxu1 %v324_v4  ;;  %v277_v11 = vld [vmem:[%s501_s0 + $0x28] sm:$0xff]  ;;  %v48_v13 = vpack.c.bf16 %v46_v10, %v44_v9  ;;  %v279_v14 = vld [vmem:[%s501_s0 + $0x38] sm:$0xff]  ;;  %v23_v19 = vld [vmem:[%s500_s1 + $0x40] sm:$0xff] }
   0x5   :  { %61 = vmatprep.subr.bf16.mxu0 %v292_v0  ;;  %114 = vmatprep.subr.bf16.mxu1 %v292_v0  ;;  %v22_v16 = vld [vmem:[%s500_s1 + $0x38] sm:$0xff]  ;;  %v108_v17 = vpack.c.bf16 %v279_v14, %v277_v11  ;;  %v24_v20 = vld [vmem:[%s500_s1 + $0x48] sm:$0xff]  ;;  %v25_v22 = vld [vmem:[%s500_s1 + $0x50] sm:$0xff] }
   0x6   :  { %275 = vmatprep.mubr.msk.bf16.mxu0 %vm55_vm0, %v48_v13  ;;  %v369_v18 = vpack.c.bf16 %v22_v16, %v21_v15  ;;  %v381_v21 = vpack.c.bf16 %v24_v20, %v23_v19  ;;  %v26_v23 = vld [vmem:[%s500_s1 + $0x58] sm:$0xff]  ;;  %v27_v25 = vld [vmem:[%s500_s1 + $0x60] sm:$0xff]  ;;  %v28_v26 = vld [vmem:[%s500_s1 + $0x68] sm:$0xff] }
   0x7   :  { %280 = vmatprep.mubr.msk.bf16.mxu1 %vm55_vm0, %v108_v17  ;;  %v393_v24 = vpack.c.bf16 %v26_v23, %v25_v22  ;;  %v39_v27 = vpack.c.bf16 %v28_v26, %v27_v25  ;;  %v29_v28 = vld [vmem:[%s500_s1 + $0x70] sm:$0xff]  ;;  %v30_v29 = vld [vmem:[%s500_s1 + $0x78] sm:$0xff]  ;;  %v31_v31 = vld [vmem:[%s500_s1 + $0x80] sm:$0xff] }
   0x8   :  { %62 = vmatpush1.bf16.msra.mxu0 %v331_v6  ;;  %115 = vmatpush1.bf16.msra.mxu1 %v331_v6  ;;  %v40_v30 = vpack.c.bf16 %v30_v29, %v29_v28  ;;  %v32_v32 = vld [vmem:[%s500_s1 + $0x88] sm:$0xff]  ;;  %v43_v33 = vld [vmem:[%s501_s0] sm:$0xff]  ;;  %v45_v35 = vld [vmem:[%s501_s0 + $0x10] sm:$0xff] }
   0x9   :  { %63 = vmatprep.subr.bf16.mxu0 %v292_v0  ;;  %116 = vmatprep.subr.bf16.mxu1 %v292_v0  ;;  %v41_v34 = vpack.c.bf16 %v32_v32, %v31_v31  ;;  %v276_v36 = vld [vmem:[%s501_s0 + $0x20] sm:$0xff]  ;;  %v278_v37 = vld [vmem:[%s501_s0 + $0x30] sm:$0xff]  ;;  %v282_v38 = vld [vmem:[%s501_s0 + $0x48] sm:$0xff]  ;;  %v47_v39 = vpack.c.bf16 %v45_v35, %v43_v33 }
   0xa   :  { %v107_v40 = vpack.c.bf16 %v278_v37, %v276_v36  ;;  %v284_v41 = vld [vmem:[%s501_s0 + $0x58] sm:$0xff]  ;;  %v287_v42 = vld [vmem:[%s501_s0 + $0x68] sm:$0xff]  ;;  %v281_v46 = vld [vmem:[%s501_s0 + $0x40] sm:$0xff] }
   0xb   :  { %v289_v43 = vld [vmem:[%s501_s0 + $0x78] sm:$0xff]  ;;  %v163_v44 = vpack.c.bf16 %v284_v41, %v282_v38  ;;  %v283_v47 = vld [vmem:[%s501_s0 + $0x50] sm:$0xff]  ;;  %v286_v48 = vld [vmem:[%s501_s0 + $0x60] sm:$0xff] }
   0xc   :  { %64 = vmatpush1.bf16.msra.mxu0 %v352_v12  ;;  %117 = vmatpush1.bf16.msra.mxu1 %v352_v12  ;;  %v216_v45 = vpack.c.bf16 %v289_v43, %v287_v42  ;;  %v288_v49 = vld [vmem:[%s501_s0 + $0x70] sm:$0xff]  ;;  %v162_v50 = vpack.c.bf16 %v283_v47, %v281_v46  ;;  %v274_v52 = vld [vmem:[%s502_s2] ss:$0 sm:$0xff] }
   0xd   :  { %65 = vmatprep.subr.bf16.mxu0 %v292_v0  ;;  %118 = vmatprep.subr.bf16.mxu1 %v292_v0  ;;  %v215_v51 = vpack.c.bf16 %v288_v49, %v286_v48 }
  0x10   :  { %66 = vmatpush1.bf16.msra.mxu0 %v369_v18  ;;  %119 = vmatpush1.bf16.msra.mxu1 %v369_v18 }
  0x11   :  { %67 = vmatprep.subr.bf16.mxu0 %v292_v0  ;;  %120 = vmatprep.subr.bf16.mxu1 %v292_v0 }
  0x14   :  { %68 = vmatpush1.bf16.msra.mxu0 %v381_v21  ;;  %121 = vmatpush1.bf16.msra.mxu1 %v381_v21 }
  0x15   :  { %69 = vmatprep.subr.bf16.mxu0 %v292_v0  ;;  %122 = vmatprep.subr.bf16.mxu1 %v292_v0 }
  0x18   :  { %70 = vmatpush1.bf16.msra.mxu0 %v393_v24  ;;  %123 = vmatpush1.bf16.msra.mxu1 %v393_v24 }
  0x19   :  { %71 = vmatprep.subr.bf16.mxu0 %v292_v0  ;;  %124 = vmatprep.subr.bf16.mxu1 %v292_v0 }
  0x1c   :  { %72 = vmatpush1.bf16.msra.mxu0 %v39_v27  ;;  %125 = vmatpush1.bf16.msra.mxu1 %v39_v27 }
  0x1d   :  { %73 = vmatprep.subr.bf16.mxu0 %v292_v0  ;;  %126 = vmatprep.subr.bf16.mxu1 %v292_v0 }
  0x20   :  { %74 = vmatpush1.bf16.msra.mxu0 %v40_v30  ;;  %127 = vmatpush1.bf16.msra.mxu1 %v40_v30 }
  0x21   :  { %75 = vmatprep.subr.bf16.mxu0 %v292_v0  ;;  %128 = vmatprep.subr.bf16.mxu1 %v292_v0 }
  0x24   :  { %76 = vmatpush1.bf16.msra.mxu0 %v41_v34  ;;  %129 = vmatpush1.bf16.msra.mxu1 %v41_v34 }
  0x25   :  { %167 = vmatprep.subr.bf16.mxu0 %v292_v0  ;;  %220 = vmatprep.subr.bf16.mxu1 %v292_v0 }
  0x27   :  { %92 = vmatmul.mubr.bf16.vlgmr.msra.gmra.mrb[0].mxu0 %v47_v39  ;;  %145 = vmatmul.mubr.bf16.vlgmr.msra.gmra.mrb[0].mxu1 %v107_v40 }
  0x28   :  { %168 = vmatpush1.bf16.msra.mxu0 %v324_v4  ;;  %221 = vmatpush1.bf16.msra.mxu1 %v324_v4 }
  0x29   :  { %169 = vmatprep.subr.bf16.mxu0 %v292_v0  ;;  %222 = vmatprep.subr.bf16.mxu1 %v292_v0 }
  0x2a   :  { %285 = vmatprep.mubr.msk.bf16.mxu0 %vm55_vm0, %v163_v44  ;;  %290 = vmatprep.mubr.msk.bf16.mxu1 %vm55_vm0, %v216_v45 }
  0x2c   :  { %170 = vmatpush1.bf16.msra.mxu0 %v331_v6  ;;  %223 = vmatpush1.bf16.msra.mxu1 %v331_v6 }
  0x2d   :  { %171 = vmatprep.subr.bf16.mxu0 %v292_v0  ;;  %224 = vmatprep.subr.bf16.mxu1 %v292_v0 }
  0x30   :  { %172 = vmatpush1.bf16.msra.mxu0 %v352_v12  ;;  %225 = vmatpush1.bf16.msra.mxu1 %v352_v12 }
  0x31   :  { %173 = vmatprep.subr.bf16.mxu0 %v292_v0  ;;  %226 = vmatprep.subr.bf16.mxu1 %v292_v0 }
  0x34   :  { %174 = vmatpush1.bf16.msra.mxu0 %v369_v18  ;;  %227 = vmatpush1.bf16.msra.mxu1 %v369_v18 }
  0x35   :  { %175 = vmatprep.subr.bf16.mxu0 %v292_v0  ;;  %228 = vmatprep.subr.bf16.mxu1 %v292_v0 }
  0x38   :  { %176 = vmatpush1.bf16.msra.mxu0 %v381_v21  ;;  %229 = vmatpush1.bf16.msra.mxu1 %v381_v21 }
  0x39   :  { %177 = vmatprep.subr.bf16.mxu0 %v292_v0  ;;  %230 = vmatprep.subr.bf16.mxu1 %v292_v0 }
  0x3c   :  { %178 = vmatpush1.bf16.msra.mxu0 %v393_v24  ;;  %231 = vmatpush1.bf16.msra.mxu1 %v393_v24 }
  0x3d   :  { %179 = vmatprep.subr.bf16.mxu0 %v292_v0  ;;  %232 = vmatprep.subr.bf16.mxu1 %v292_v0 }
  0x40   :  { %180 = vmatpush1.bf16.msra.mxu0 %v39_v27  ;;  %233 = vmatpush1.bf16.msra.mxu1 %v39_v27 }
  0x41   :  { %181 = vmatprep.subr.bf16.mxu0 %v292_v0  ;;  %234 = vmatprep.subr.bf16.mxu1 %v292_v0 }
  0x44   :  { %182 = vmatpush1.bf16.msra.mxu0 %v40_v30  ;;  %235 = vmatpush1.bf16.msra.mxu1 %v40_v30 }
  0x45   :  { %183 = vmatprep.subr.bf16.mxu0 %v292_v0  ;;  %236 = vmatprep.subr.bf16.mxu1 %v292_v0 }
  0x48   :  { %184 = vmatpush1.bf16.msra.mxu0 %v41_v34  ;;  %237 = vmatpush1.bf16.msra.mxu1 %v41_v34 }
  0x4b   :  { %200 = vmatmul.mubr.bf16.vlgmr.msra.gmra.mrb[4].mxu0 %v162_v50  ;;  %253 = vmatmul.mubr.bf16.vlgmr.msra.gmra.mrb[4].mxu1 %v215_v51 }
  0xfa   :  { %v93_v53 = vpop.f32.mrb[0].mxu0  ;;  %v146_v54 = vpop.f32.mrb[0].mxu1 }
  0xfb   :  { %v94_v55 = vadd.f32 %v274_v52, %v93_v53  ;;  %v147_v56 = vadd.f32 %v274_v52, %v146_v54  ;;  %v95_v57 = vpop.f32.mrb[1].mxu0  ;;  %v148_v58 = vpop.f32.mrb[1].mxu1 }
  0xfc   :  { %v96_v59 = vpop.f32.mrb[2].mxu0  ;;  %v149_v60 = vpop.f32.mrb[2].mxu1 }
  0xfd   :  { %v100_v61 = vmax.f32 %v94_v55, 0.0  ;;  %v153_v62 = vmax.f32 %v147_v56, 0.0  ;;  %v97_v63 = vadd.f32 %v274_v52, %v96_v59  ;;  %v150_v0 = vadd.f32 %v274_v52, %v149_v60  ;;  %v98_v1 = vpop.f32.mrb[3].mxu0  ;;  %v151_v2 = vpop.f32.mrb[3].mxu1 }
  0xff   :  { %v155_v3 = vmax.f32 %v100_v61, %v153_v62  ;;  %v101_v4 = vmax.f32 %v97_v63, 0.0  ;;  %v154_v5 = vmax.f32 %v150_v0, 0.0 }
 0x101   :  { %v156_v6 = vmax.f32 %v101_v4, %v154_v5 }
 0x11e   :  { %v201_v7 = vpop.f32.mrb[4].mxu0  ;;  %v254_v8 = vpop.f32.mrb[4].mxu1 }
 0x11f   :  { %v202_v9 = vadd.f32 %v274_v52, %v201_v7  ;;  %v255_v10 = vadd.f32 %v274_v52, %v254_v8  ;;  %v203_v11 = vpop.f32.mrb[5].mxu0  ;;  %v256_v12 = vpop.f32.mrb[5].mxu1 }
 0x120   :  { %v204_v13 = vpop.f32.mrb[6].mxu0  ;;  %v257_v14 = vpop.f32.mrb[6].mxu1 }
 0x121   :  { %v208_v15 = vmax.f32 %v202_v9, 0.0  ;;  %v261_v16 = vmax.f32 %v255_v10, 0.0  ;;  %v205_v17 = vadd.f32 %v274_v52, %v204_v13  ;;  %v258_v18 = vadd.f32 %v274_v52, %v257_v14  ;;  %v206_v19 = vpop.f32.mrb[7].mxu0  ;;  %v259_v20 = vpop.f32.mrb[7].mxu1 }
 0x123   :  { %v263_v21 = vmax.f32 %v208_v15, %v261_v16  ;;  %v209_v22 = vmax.f32 %v205_v17, 0.0  ;;  %v262_v23 = vmax.f32 %v258_v18, 0.0 }
 0x125   :  { %v265_v24 = vmax.f32 %v155_v3, %v263_v21  ;;  %v264_v25 = vmax.f32 %v209_v22, %v262_v23 }
 0x127   :  { %268 = vst.msk [vmem:[%s503_s3] sm:$0xff] %vm267_vm1, %v265_v24  ;;  %v266_v26 = vmax.f32 %v156_v6, %v264_v25 }
 0x129   :  { %269 = vst.msk [vmem:[%s503_s3 + $0x8] sm:$0xff] %vm267_vm1, %v266_v26 }

// kernel: wsal_forward.3
= control target key start
LH: loop header
LB: loop body
LE: loop exit
PB: predicated region body
PF: predicated region fallthrough
CT: control target
= control target key end

     0   :  { %vm80_vm0 = vcmask 1043456   ;;  %vm81_vm1 = vcmask 1044480   ;;  %v1107_v0 = vmov 0.0   ;;  %v1108_v3 = vmov 65535   ;;  %s1667_s1 = inlined_call_operand.vmem [shape: f32[9,16], index: 1, kind: input, shape index: {}]   ;;  %s1668_s0 = inlined_call_operand.vmem [shape: f32[4,144,9], index: 0, kind: input, shape index: {}]   ;;  %s1669_s2 = inlined_call_operand.vmem [shape: f32[1,16], index: 2, kind: input, shape index: {}]   ;;  %s1670_s3 = inlined_call_operand.vmem [shape: f32[144,16], index: 3, kind: output, shape index: {}]  }
   0x1   :  { %952 = vmatprep.subr.bf16.mxu0 %v1107_v0  ;;  %990 = vmatprep.subr.bf16.mxu1 %v1107_v0  ;;  %v15_v1 = vld [vmem:[%s1667_s1] sm:$0xff]  ;;  %v16_v2 = vld [vmem:[%s1667_s1 + $0x8] sm:$0x1]  ;;  %v82_v4 = vsel %vm80_vm0, 4294967295, %v1108_v3  ;;  %vm1109_vm2 = vmmov 0   ;;  %v831_v9 = vld [vmem:[%s1668_s0 + $0x90] sm:$0xff] }
   0x2   :  { %v19_v5 = vld [vmem:[%s1668_s0] sm:$0xff]  ;;  %v17_v6 = vpack.c.bf16 %v16_v2, %v15_v1  ;;  %v83_v7 = vsel %vm81_vm1, %v82_v4, 0  ;;  %954 = vmatprep.mubr.msk.bf16.mxu0 %vm1109_vm2, %v1107_v0  ;;  %992 = vmatprep.mubr.msk.bf16.mxu1 %vm1109_vm2, %v1107_v0  ;;  %v20_v8 = vld [vmem:[%s1668_s0 + $0x8] sm:$0xff]  ;;  %v832_v10 = vld [vmem:[%s1668_s0 + $0x98] sm:$0xff]  ;;  %vm52_vm3 = vcmask 72704   ;;  %vm798_vm4 = vcmask 130048  }
   0x3   :  { %v37_v12 = vpack.c.bf16 %v20_v8, %v19_v5  ;;  %v229_v13 = vpack.c.bf16 %v832_v10, %v831_v9  ;;  %v21_v14 = vld [vmem:[%s1668_s0 + $0x10] sm:$0xff]  ;;  %v22_v15 = vld [vmem:[%s1668_s0 + $0x18] sm:$0xff]  ;;  %v833_v16 = vld [vmem:[%s1668_s0 + $0xa0] sm:$0xff] }
   0x4   :  { %v85_v11 = vand.u32 %v83_v7, %v17_v6  ;;  %v834_v17 = vld [vmem:[%s1668_s0 + $0xa8] sm:$0xff]  ;;  %v38_v18 = vpack.c.bf16 %v22_v15, %v21_v14  ;;  %v23_v20 = vld [vmem:[%s1668_s0 + $0x20] sm:$0xff]  ;;  %v835_v22 = vld [vmem:[%s1668_s0 + $0xb0] sm:$0xff] }
   0x5   :  { %v230_v19 = vpack.c.bf16 %v834_v17, %v833_v16  ;;  %v24_v21 = vld [vmem:[%s1668_s0 + $0x28] sm:$0xff]  ;;  %v836_v23 = vld [vmem:[%s1668_s0 + $0xb8] sm:$0xff]  ;;  %v25_v26 = vld [vmem:[%s1668_s0 + $0x30] sm:$0xff] }
   0x6   :  { %953 = vmatpush3.bf16.msra.mxu0 %v85_v11  ;;  %991 = vmatpush3.bf16.msra.mxu1 %v85_v11  ;;  %v39_v24 = vpack.c.bf16 %v24_v21, %v23_v20  ;;  %v231_v25 = vpack.c.bf16 %v836_v23, %v835_v22  ;;  %v26_v27 = vld [vmem:[%s1668_s0 + $0x38] sm:$0xff]  ;;  %v837_v28 = vld [vmem:[%s1668_s0 + $0xc0] sm:$0xff]  ;;  %v838_v29 = vld [vmem:[%s1668_s0 + $0xc8] sm:$0xff] }
   0x7   :  { %1028 = vmatprep.subr.bf16.mxu0 %v1107_v0  ;;  %1066 = vmatprep.subr.bf16.mxu1 %v1107_v0  ;;  %v40_v30 = vpack.c.bf16 %v26_v27, %v25_v26  ;;  %v232_v31 = vpack.c.bf16 %v838_v29, %v837_v28  ;;  %v27_v32 = vld [vmem:[%s1668_s0 + $0x40] sm:$0xff]  ;;  %v28_v33 = vld [vmem:[%s1668_s0 + $0x48] sm:$0xff]  ;;  %v839_v34 = vld [vmem:[%s1668_s0 + $0xd0] sm:$0xff] }
   0x8   :  { %v840_v35 = vld [vmem:[%s1668_s0 + $0xd8] sm:$0xff]  ;;  %v41_v36 = vpack.c.bf16 %v28_v33, %v27_v32  ;;  %v29_v38 = vld [vmem:[%s1668_s0 + $0x50] sm:$0xff]  ;;  %v841_v40 = vld [vmem:[%s1668_s0 + $0xe0] sm:$0xff] }
   0x9   :  { %955 = vmatmul.mubr.msk.bf16.vlgmr.msra.gmra.mrb[0].mxu0 %vm52_vm3, %v37_v12  ;;  %993 = vmatmul.mubr.msk.bf16.vlgmr.msra.gmra.mrb[0].mxu1 %vm52_vm3, %v229_v13  ;;  %v233_v37 = vpack.c.bf16 %v840_v35, %v839_v34  ;;  %v30_v39 = vld [vmem:[%s1668_s0 + $0x58] sm:$0xff]  ;;  %v842_v41 = vld [vmem:[%s1668_s0 + $0xe8] sm:$0xff]  ;;  %v31_v44 = vld [vmem:[%s1668_s0 + $0x60] sm:$0xff] }
   0xa   :  { %1029 = vmatpush3.bf16.msra.mxu0 %v85_v11  ;;  %1067 = vmatpush3.bf16.msra.mxu1 %v85_v11  ;;  %v42_v42 = vpack.c.bf16 %v30_v39, %v29_v38  ;;  %v234_v43 = vpack.c.bf16 %v842_v41, %v841_v40  ;;  %v32_v45 = vld [vmem:[%s1668_s0 + $0x68] sm:$0xff]  ;;  %v843_v46 = vld [vmem:[%s1668_s0 + $0xf0] sm:$0xff]  ;;  %v844_v47 = vld [vmem:[%s1668_s0 + $0xf8] sm:$0xff] }
   0xb   :  { %958 = vmatprep.mubr.msk.bf16.mxu0 %vm1109_vm2, %v1107_v0  ;;  %996 = vmatprep.mubr.msk.bf16.mxu1 %vm1109_vm2, %v1107_v0  ;;  %v43_v48 = vpack.c.bf16 %v32_v45, %v31_v44  ;;  %v235_v49 = vpack.c.bf16 %v844_v47, %v843_v46  ;;  %v33_v50 = vld [vmem:[%s1668_s0 + $0x70] sm:$0xff]  ;;  %v34_v51 = vld [vmem:[%s1668_s0 + $0x78] sm:$0xff]  ;;  %v845_v52 = vld [vmem:[%s1668_s0 + $0x100] sm:$0xff] }
   0xc   :  { %v846_v53 = vld [vmem:[%s1668_s0 + $0x108] sm:$0xff]  ;;  %v44_v54 = vpack.c.bf16 %v34_v51, %v33_v50  ;;  %v35_v56 = vld [vmem:[%s1668_s0 + $0x80] sm:$0xff]  ;;  %v847_v58 = vld [vmem:[%s1668_s0 + $0x110] sm:$0xff] }
   0xd   :  { %v236_v55 = vpack.c.bf16 %v846_v53, %v845_v52  ;;  %v36_v57 = vld [vmem:[%s1668_s0 + $0x88] sm:$0xff]  ;;  %v848_v59 = vld [vmem:[%s1668_s0 + $0x118] sm:$0xff]  ;;  %v858_v62 = vld [vmem:[%s1668_s0 + $0x120] sm:$0xff] }
   0xe   :  { %v45_v60 = vpack.c.bf16 %v36_v57, %v35_v56  ;;  %v237_v61 = vpack.c.bf16 %v848_v59, %v847_v58  ;;  %v859_v63 = vld [vmem:[%s1668_s0 + $0x128] sm:$0xff]  ;;  %v885_v1 = vld [vmem:[%s1668_s0 + $0x1b0] sm:$0xff]  ;;  %v886_v2 = vld [vmem:[%s1668_s0 + $0x1b8] sm:$0xff] }
   0xf   :  { %v425_v3 = vpack.c.bf16 %v859_v63, %v858_v62  ;;  %v603_v4 = vpack.c.bf16 %v886_v2, %v885_v1  ;;  %v860_v5 = vld [vmem:[%s1668_s0 + $0x130] sm:$0xff]  ;;  %v861_v6 = vld [vmem:[%s1668_s0 + $0x138] sm:$0xff]  ;;  %v887_v7 = vld [vmem:[%s1668_s0 + $0x1c0] sm:$0xff] }
  0x10   :  { %v888_v8 = vld [vmem:[%s1668_s0 + $0x1c8] sm:$0xff]  ;;  %v426_v9 = vpack.c.bf16 %v861_v6, %v860_v5  ;;  %v862_v11 = vld [vmem:[%s1668_s0 + $0x140] sm:$0xff]  ;;  %v889_v13 = vld [vmem:[%s1668_s0 + $0x1d0] sm:$0xff] }
  0x11   :  { %959 = vmatmul.mubr.msk.bf16.gmra.mrb[4].mxu0 %vm52_vm3, %v38_v18  ;;  %997 = vmatmul.mubr.msk.bf16.gmra.mrb[4].mxu1 %vm52_vm3, %v230_v19  ;;  %v604_v10 = vpack.c.bf16 %v888_v8, %v887_v7  ;;  %v863_v12 = vld [vmem:[%s1668_s0 + $0x148] sm:$0xff]  ;;  %v890_v14 = vld [vmem:[%s1668_s0 + $0x1d8] sm:$0xff]  ;;  %v864_v17 = vld [vmem:[%s1668_s0 + $0x150] sm:$0xff] }
  0x12   :  { %962 = vmatprep.mubr.msk.bf16.mxu0 %vm1109_vm2, %v1107_v0  ;;  %1000 = vmatprep.mubr.msk.bf16.mxu1 %vm1109_vm2, %v1107_v0  ;;  %v427_v15 = vpack.c.bf16 %v863_v12, %v862_v11  ;;  %v605_v16 = vpack.c.bf16 %v890_v14, %v889_v13  ;;  %v865_v18 = vld [vmem:[%s1668_s0 + $0x158] sm:$0xff]  ;;  %v891_v19 = vld [vmem:[%s1668_s0 + $0x1e0] sm:$0xff]  ;;  %v892_v20 = vld [vmem:[%s1668_s0 + $0x1e8] sm:$0xff] }
  0x13   :  { %v428_v21 = vpack.c.bf16 %v865_v18, %v864_v17  ;;  %v606_v22 = vpack.c.bf16 %v892_v20, %v891_v19  ;;  %v866_v23 = vld [vmem:[%s1668_s0 + $0x160] sm:$0xff]  ;;  %v894_v26 = vld [vmem:[%s1668_s0 + $0x1f8] sm:$0xff]  ;;  %v868_v29 = vld [vmem:[%s1668_s0 + $0x170] sm:$0xff] }
  0x14   :  { %v896_v32 = vld [vmem:[%s1668_s0 + $0x208] sm:$0xff]  ;;  %v870_v35 = vld [vmem:[%s1668_s0 + $0x180] sm:$0xff]  ;;  %v898_v38 = vld [vmem:[%s1668_s0 + $0x218] sm:$0xff] }
  0x15   :  { %v872_v41 = vld [vmem:[%s1668_s0 + $0x190] sm:$0xff]  ;;  %v900_v44 = vld [vmem:[%s1668_s0 + $0x228] sm:$0xff]  ;;  %v874_v47 = vld [vmem:[%s1668_s0 + $0x1a0] sm:$0xff] }
  0x16   :  { %v902_v50 = vld [vmem:[%s1668_s0 + $0x238] sm:$0xff] }
  0x19   :  { %963 = vmatmul.mubr.msk.bf16.gmra.mrb[8].mxu0 %vm52_vm3, %v39_v24  ;;  %1001 = vmatmul.mubr.msk.bf16.gmra.mrb[8].mxu1 %vm52_vm3, %v231_v25  ;;  %v867_v24 = vld [vmem:[%s1668_s0 + $0x168] sm:$0xff]  ;;  %v893_v25 = vld [vmem:[%s1668_s0 + $0x1f0] sm:$0xff] }
  0x1a   :  { %966 = vmatprep.mubr.msk.bf16.mxu0 %vm1109_vm2, %v1107_v0  ;;  %1004 = vmatprep.mubr.msk.bf16.mxu1 %vm1109_vm2, %v1107_v0  ;;  %v429_v27 = vpack.c.bf16 %v867_v24, %v866_v23  ;;  %v607_v28 = vpack.c.bf16 %v894_v26, %v893_v25 }
  0x21   :  { %967 = vmatmul.mubr.msk.bf16.gmra.mrb[12].mxu0 %vm52_vm3, %v40_v30  ;;  %1005 = vmatmul.mubr.msk.bf16.gmra.mrb[12].mxu1 %vm52_vm3, %v232_v31  ;;  %v869_v30 = vld [vmem:[%s1668_s0 + $0x178] sm:$0xff]  ;;  %v895_v31 = vld [vmem:[%s1668_s0 + $0x200] sm:$0xff] }
  0x22   :  { %970 = vmatprep.mubr.msk.bf16.mxu0 %vm1109_vm2, %v1107_v0  ;;  %1008 = vmatprep.mubr.msk.bf16.mxu1 %vm1109_vm2, %v1107_v0  ;;  %v430_v33 = vpack.c.bf16 %v869_v30, %v868_v29  ;;  %v608_v34 = vpack.c.bf16 %v896_v32, %v895_v31 }
  0x29   :  { %971 = vmatmul.mubr.msk.bf16.gmra.mrb[16].mxu0 %vm52_vm3, %v41_v36  ;;  %1009 = vmatmul.mubr.msk.bf16.gmra.mrb[16].mxu1 %vm52_vm3, %v233_v37  ;;  %v871_v36 = vld [vmem:[%s1668_s0 + $0x188] sm:$0xff]  ;;  %v897_v37 = vld [vmem:[%s1668_s0 + $0x210] sm:$0xff] }
  0x2a   :  { %974 = vmatprep.mubr.msk.bf16.mxu0 %vm1109_vm2, %v1107_v0  ;;  %1012 = vmatprep.mubr.msk.bf16.mxu1 %vm1109_vm2, %v1107_v0  ;;  %v431_v39 = vpack.c.bf16 %v871_v36, %v870_v35  ;;  %v609_v40 = vpack.c.bf16 %v898_v38, %v897_v37 }
  0x31   :  { %975 = vmatmul.mubr.msk.bf16.gmra.mrb[20].mxu0 %vm52_vm3, %v42_v42  ;;  %1013 = vmatmul.mubr.msk.bf16.gmra.mrb[20].mxu1 %vm52_vm3, %v234_v43  ;;  %v873_v42 = vld [vmem:[%s1668_s0 + $0x198] sm:$0xff]  ;;  %v899_v43 = vld [vmem:[%s1668_s0 + $0x220] sm:$0xff] }
  0x32   :  { %978 = vmatprep.mubr.msk.bf16.mxu0 %vm1109_vm2, %v1107_v0  ;;  %1016 = vmatprep.mubr.msk.bf16.mxu1 %vm1109_vm2, %v1107_v0  ;;  %v432_v45 = vpack.c.bf16 %v873_v42, %v872_v41  ;;  %v610_v46 = vpack.c.bf16 %v900_v44, %v899_v43 }
  0x39   :  { %979 = vmatmul.mubr.msk.bf16.gmra.mrb[24].mxu0 %vm52_vm3, %v43_v48  ;;  %1017 = vmatmul.mubr.msk.bf16.gmra.mrb[24].mxu1 %vm52_vm3, %v235_v49  ;;  %v875_v48 = vld [vmem:[%s1668_s0 + $0x1a8] sm:$0xff]  ;;  %v901_v49 = vld [vmem:[%s1668_s0 + $0x230] sm:$0xff] }
  0x3a   :  { %982 = vmatprep.mubr.msk.bf16.mxu0 %vm1109_vm2, %v1107_v0  ;;  %1020 = vmatprep.mubr.msk.bf16.mxu1 %vm1109_vm2, %v1107_v0  ;;  %v433_v51 = vpack.c.bf16 %v875_v48, %v874_v47  ;;  %v611_v52 = vpack.c.bf16 %v902_v50, %v901_v49 }
  0x41   :  { %983 = vmatmul.mubr.msk.bf16.gmra.mrb[28].mxu0 %vm52_vm3, %v44_v54  ;;  %1021 = vmatmul.mubr.msk.bf16.gmra.mrb[28].mxu1 %vm52_vm3, %v236_v55 }
  0x42   :  { %986 = vmatprep.mubr.msk.bf16.mxu0 %vm1109_vm2, %v1107_v0  ;;  %1024 = vmatprep.mubr.msk.bf16.mxu1 %vm1109_vm2, %v1107_v0 }
  0x49   :  { %987 = vmatmul.mubr.msk.bf16.gmra.mrb[32].mxu0 %vm52_vm3, %v45_v60  ;;  %1025 = vmatmul.mubr.msk.bf16.gmra.mrb[32].mxu1 %vm52_vm3, %v237_v61 }
  0x4a   :  { %1030 = vmatprep.mubr.msk.bf16.mxu0 %vm1109_vm2, %v1107_v0  ;;  %1068 = vmatprep.mubr.msk.bf16.mxu1 %vm1109_vm2, %v1107_v0 }
  0x51   :  { %1031 = vmatmul.mubr.msk.bf16.vlgmr.msra.gmra.mrb[36].mxu0 %vm52_vm3, %v425_v3  ;;  %1069 = vmatmul.mubr.msk.bf16.vlgmr.msra.gmra.mrb[36].mxu1 %vm52_vm3, %v603_v4 }
  0x52   :  { %1034 = vmatprep.mubr.msk.bf16.mxu0 %vm1109_vm2, %v1107_v0  ;;  %1072 = vmatprep.mubr.msk.bf16.mxu1 %vm1109_vm2, %v1107_v0 }
  0x59   :  { %1035 = vmatmul.mubr.msk.bf16.gmra.mrb[40].mxu0 %vm52_vm3, %v426_v9  ;;  %1073 = vmatmul.mubr.msk.bf16.gmra.mrb[40].mxu1 %vm52_vm3, %v604_v10 }
  0x5a   :  { %1038 = vmatprep.mubr.msk.bf16.mxu0 %vm1109_vm2, %v1107_v0  ;;  %1076 = vmatprep.mubr.msk.bf16.mxu1 %vm1109_vm2, %v1107_v0 }
  0x61   :  { %1039 = vmatmul.mubr.msk.bf16.gmra.mrb[44].mxu0 %vm52_vm3, %v427_v15  ;;  %1077 = vmatmul.mubr.msk.bf16.gmra.mrb[44].mxu1 %vm52_vm3, %v605_v16 }
  0x62   :  { %1042 = vmatprep.mubr.msk.bf16.mxu0 %vm1109_vm2, %v1107_v0  ;;  %1080 = vmatprep.mubr.msk.bf16.mxu1 %vm1109_vm2, %v1107_v0 }
  0x69   :  { %1043 = vmatmul.mubr.msk.bf16.gmra.mrb[48].mxu0 %vm52_vm3, %v428_v21  ;;  %1081 = vmatmul.mubr.msk.bf16.gmra.mrb[48].mxu1 %vm52_vm3, %v606_v22 }
  0x6a   :  { %1046 = vmatprep.mubr.msk.bf16.mxu0 %vm1109_vm2, %v1107_v0  ;;  %1084 = vmatprep.mubr.msk.bf16.mxu1 %vm1109_vm2, %v1107_v0 }
  0x71   :  { %1047 = vmatmul.mubr.msk.bf16.gmra.mrb[52].mxu0 %vm52_vm3, %v429_v27  ;;  %1085 = vmatmul.mubr.msk.bf16.gmra.mrb[52].mxu1 %vm52_vm3, %v607_v28 }
  0x72   :  { %1050 = vmatprep.mubr.msk.bf16.mxu0 %vm1109_vm2, %v1107_v0  ;;  %1088 = vmatprep.mubr.msk.bf16.mxu1 %vm1109_vm2, %v1107_v0 }
  0x79   :  { %1051 = vmatmul.mubr.msk.bf16.gmra.mrb[56].mxu0 %vm52_vm3, %v430_v33  ;;  %1089 = vmatmul.mubr.msk.bf16.gmra.mrb[56].mxu1 %vm52_vm3, %v608_v34 }
  0x7a   :  { %1054 = vmatprep.mubr.msk.bf16.mxu0 %vm1109_vm2, %v1107_v0  ;;  %1092 = vmatprep.mubr.msk.bf16.mxu1 %vm1109_vm2, %v1107_v0 }
  0x81   :  { %1055 = vmatmul.mubr.msk.bf16.gmra.mrb[60].mxu0 %vm52_vm3, %v431_v39  ;;  %1093 = vmatmul.mubr.msk.bf16.gmra.mrb[60].mxu1 %vm52_vm3, %v609_v40 }
  0x82   :  { %1058 = vmatprep.mubr.msk.bf16.mxu0 %vm1109_vm2, %v1107_v0  ;;  %1096 = vmatprep.mubr.msk.bf16.mxu1 %vm1109_vm2, %v1107_v0 }
  0x89   :  { %1059 = vmatmul.mubr.msk.bf16.gmra.mrb[64].mxu0 %vm52_vm3, %v432_v45  ;;  %1097 = vmatmul.mubr.msk.bf16.gmra.mrb[64].mxu1 %vm52_vm3, %v610_v46 }
  0x8a   :  { %1062 = vmatprep.mubr.msk.bf16.mxu0 %vm1109_vm2, %v1107_v0  ;;  %1100 = vmatprep.mubr.msk.bf16.mxu1 %vm1109_vm2, %v1107_v0  ;;  %v1467_v0 = vld [vmem:[%s1669_s2] ss:$0 sm:$0xff] }
  0x91   :  { %1063 = vmatmul.mubr.msk.bf16.gmra.mrb[68].mxu0 %vm52_vm3, %v433_v51  ;;  %1101 = vmatmul.mubr.msk.bf16.gmra.mrb[68].mxu1 %vm52_vm3, %v611_v52 }
  0xdc   :  { %v121_v53 = vpop.f32.mrb[0].mxu0  ;;  %v299_v54 = vpop.f32.mrb[0].mxu1 }
  0xdd   :  { %v122_v55 = vadd.f32 %v1467_v0, %v121_v53  ;;  %v300_v56 = vadd.f32 %v1467_v0, %v299_v54  ;;  %v956_v57 = vpop.f32.mrb[1].mxu0  ;;  %v994_v58 = vpop.f32.mrb[1].mxu1 }
  0xde   :  { %v124_v59 = vpop.f32.mrb[2].mxu0  ;;  %v302_v60 = vpop.f32.mrb[2].mxu1 }
  0xdf   :  { %v192_v61 = vmax.f32 %v122_v55, 0.0  ;;  %v370_v62 = vmax.f32 %v300_v56, 0.0  ;;  %v125_v63 = vadd.f32 %v1467_v0, %v124_v59  ;;  %v303_v1 = vadd.f32 %v1467_v0, %v302_v60  ;;  %v957_v2 = vpop.f32.mrb[3].mxu0  ;;  %v995_v3 = vpop.f32.mrb[3].mxu1 }
  0xe1   :  { %v1473_v4 = vmax.f32 %v192_v61, %v370_v62  ;;  %v193_v5 = vmax.f32 %v125_v63, 0.0  ;;  %v371_v6 = vmax.f32 %v303_v1, 0.0 }
  0xe3   :  { %v1475_v7 = vmax.f32 %v193_v5, %v371_v6 }
  0xe4   :  { %v129_v8 = vpop.f32.mrb[4].mxu0  ;;  %v307_v9 = vpop.f32.mrb[4].mxu1 }
  0xe5   :  { %v130_v10 = vadd.f32 %v1467_v0, %v129_v8  ;;  %v308_v11 = vadd.f32 %v1467_v0, %v307_v9  ;;  %v960_v12 = vpop.f32.mrb[5].mxu0  ;;  %v998_v13 = vpop.f32.mrb[5].mxu1 }
  0xe6   :  { %v132_v14 = vpop.f32.mrb[6].mxu0  ;;  %v310_v15 = vpop.f32.mrb[6].mxu1 }
  0xe7   :  { %v194_v16 = vmax.f32 %v130_v10, 0.0  ;;  %v372_v17 = vmax.f32 %v308_v11, 0.0  ;;  %v133_v18 = vadd.f32 %v1467_v0, %v132_v14  ;;  %v311_v19 = vadd.f32 %v1467_v0, %v310_v15  ;;  %v961_v20 = vpop.f32.mrb[7].mxu0  ;;  %v999_v21 = vpop.f32.mrb[7].mxu1 }
  0xe9   :  { %v1481_v22 = vmax.f32 %v194_v16, %v372_v17  ;;  %v195_v23 = vmax.f32 %v133_v18, 0.0  ;;  %v373_v24 = vmax.f32 %v311_v19, 0.0 }
  0xeb   :  { %v1483_v25 = vmax.f32 %v195_v23, %v373_v24 }
  0xec   :  { %v137_v26 = vpop.f32.mrb[8].mxu0  ;;  %v315_v27 = vpop.f32.mrb[8].mxu1 }
  0xed   :  { %v138_v28 = vadd.f32 %v1467_v0, %v137_v26  ;;  %v316_v29 = vadd.f32 %v1467_v0, %v315_v27  ;;  %v964_v30 = vpop.f32.mrb[9].mxu0  ;;  %v1002_v31 = vpop.f32.mrb[9].mxu1 }
  0xee   :  { %v140_v32 = vpop.f32.mrb[10].mxu0  ;;  %v318_v33 = vpop.f32.mrb[10].mxu1 }
  0xef   :  { %v196_v34 = vmax.f32 %v138_v28, 0.0  ;;  %v374_v35 = vmax.f32 %v316_v29, 0.0  ;;  %v141_v36 = vadd.f32 %v1467_v0, %v140_v32  ;;  %v319_v37 = vadd.f32 %v1467_v0, %v318_v33  ;;  %v965_v38 = vpop.f32.mrb[11].mxu0  ;;  %v1003_v39 = vpop.f32.mrb[11].mxu1 }
  0xf1   :  { %v1489_v40 = vmax.f32 %v196_v34, %v374_v35  ;;  %v197_v41 = vmax.f32 %v141_v36, 0.0  ;;  %v375_v42 = vmax.f32 %v319_v37, 0.0 }
  0xf3   :  { %v1491_v43 = vmax.f32 %v197_v41, %v375_v42 }
  0xf4   :  { %v145_v44 = vpop.f32.mrb[12].mxu0  ;;  %v323_v45 = vpop.f32.mrb[12].mxu1 }
  0xf5   :  { %v146_v46 = vadd.f32 %v1467_v0, %v145_v44  ;;  %v324_v47 = vadd.f32 %v1467_v0, %v323_v45  ;;  %v968_v48 = vpop.f32.mrb[13].mxu0  ;;  %v1006_v49 = vpop.f32.mrb[13].mxu1 }
  0xf6   :  { %v148_v50 = vpop.f32.mrb[14].mxu0  ;;  %v326_v51 = vpop.f32.mrb[14].mxu1 }
  0xf7   :  { %v198_v52 = vmax.f32 %v146_v46, 0.0  ;;  %v376_v53 = vmax.f32 %v324_v47, 0.0  ;;  %v149_v54 = vadd.f32 %v1467_v0, %v148_v50  ;;  %v327_v55 = vadd.f32 %v1467_v0, %v326_v51  ;;  %v969_v56 = vpop.f32.mrb[15].mxu0  ;;  %v1007_v57 = vpop.f32.mrb[15].mxu1 }
  0xf9   :  { %v1497_v58 = vmax.f32 %v198_v52, %v376_v53  ;;  %v199_v59 = vmax.f32 %v149_v54, 0.0  ;;  %v377_v60 = vmax.f32 %v327_v55, 0.0 }
  0xfb   :  { %v1499_v61 = vmax.f32 %v199_v59, %v377_v60 }
  0xfc   :  { %v153_v62 = vpop.f32.mrb[16].mxu0  ;;  %v331_v63 = vpop.f32.mrb[16].mxu1 }
  0xfd   :  { %v154_v1 = vadd.f32 %v1467_v0, %v153_v62  ;;  %v332_v2 = vadd.f32 %v1467_v0, %v331_v63  ;;  %v972_v3 = vpop.f32.mrb[17].mxu0  ;;  %v1010_v5 = vpop.f32.mrb[17].mxu1 }
  0xfe   :  { %v156_v6 = vpop.f32.mrb[18].mxu0  ;;  %v334_v8 = vpop.f32.mrb[18].mxu1 }
  0xff   :  { %v200_v9 = vmax.f32 %v154_v1, 0.0  ;;  %v378_v10 = vmax.f32 %v332_v2, 0.0  ;;  %v157_v11 = vadd.f32 %v1467_v0, %v156_v6  ;;  %v335_v12 = vadd.f32 %v1467_v0, %v334_v8  ;;  %v973_v13 = vpop.f32.mrb[19].mxu0  ;;  %v1011_v14 = vpop.f32.mrb[19].mxu1 }
 0x101   :  { %v1505_v15 = vmax.f32 %v200_v9, %v378_v10  ;;  %v201_v16 = vmax.f32 %v157_v11, 0.0  ;;  %v379_v17 = vmax.f32 %v335_v12, 0.0 }
 0x103   :  { %v1507_v18 = vmax.f32 %v201_v16, %v379_v17 }
 0x104   :  { %v161_v19 = vpop.f32.mrb[20].mxu0  ;;  %v339_v20 = vpop.f32.mrb[20].mxu1 }
 0x105   :  { %v162_v21 = vadd.f32 %v1467_v0, %v161_v19  ;;  %v340_v23 = vadd.f32 %v1467_v0, %v339_v20  ;;  %v976_v24 = vpop.f32.mrb[21].mxu0  ;;  %v1014_v26 = vpop.f32.mrb[21].mxu1 }
 0x106   :  { %v164_v27 = vpop.f32.mrb[22].mxu0  ;;  %v342_v28 = vpop.f32.mrb[22].mxu1 }
 0x107   :  { %v202_v29 = vmax.f32 %v162_v21, 0.0  ;;  %v380_v30 = vmax.f32 %v340_v23, 0.0  ;;  %v165_v31 = vadd.f32 %v1467_v0, %v164_v27  ;;  %v343_v32 = vadd.f32 %v1467_v0, %v342_v28  ;;  %v977_v33 = vpop.f32.mrb[23].mxu0  ;;  %v1015_v34 = vpop.f32.mrb[23].mxu1 }
 0x109   :  { %v1513_v35 = vmax.f32 %v202_v29, %v380_v30  ;;  %v203_v36 = vmax.f32 %v165_v31, 0.0  ;;  %v381_v37 = vmax.f32 %v343_v32, 0.0 }
 0x10b   :  { %v1515_v38 = vmax.f32 %v203_v36, %v381_v37 }
 0x10c   :  { %v169_v39 = vpop.f32.mrb[24].mxu0  ;;  %v347_v41 = vpop.f32.mrb[24].mxu1 }
 0x10d   :  { %v170_v42 = vadd.f32 %v1467_v0, %v169_v39  ;;  %v348_v44 = vadd.f32 %v1467_v0, %v347_v41  ;;  %v980_v45 = vpop.f32.mrb[25].mxu0  ;;  %v1018_v46 = vpop.f32.mrb[25].mxu1 }
 0x10e   :  { %v172_v47 = vpop.f32.mrb[26].mxu0  ;;  %v350_v48 = vpop.f32.mrb[26].mxu1 }
 0x10f   :  { %v204_v49 = vmax.f32 %v170_v42, 0.0  ;;  %v382_v50 = vmax.f32 %v348_v44, 0.0  ;;  %v173_v51 = vadd.f32 %v1467_v0, %v172_v47  ;;  %v351_v52 = vadd.f32 %v1467_v0, %v350_v48  ;;  %v981_v53 = vpop.f32.mrb[27].mxu0  ;;  %v1019_v54 = vpop.f32.mrb[27].mxu1 }
 0x111   :  { %v1521_v55 = vmax.f32 %v204_v49, %v382_v50  ;;  %v205_v56 = vmax.f32 %v173_v51, 0.0  ;;  %v383_v57 = vmax.f32 %v351_v52, 0.0 }
 0x113   :  { %v1523_v59 = vmax.f32 %v205_v56, %v383_v57 }
 0x114   :  { %v177_v60 = vpop.f32.mrb[28].mxu0  ;;  %v355_v62 = vpop.f32.mrb[28].mxu1 }
 0x115   :  { %v178_v63 = vadd.f32 %v1467_v0, %v177_v60  ;;  %v356_v1 = vadd.f32 %v1467_v0, %v355_v62  ;;  %v984_v2 = vpop.f32.mrb[29].mxu0  ;;  %v1022_v3 = vpop.f32.mrb[29].mxu1 }
 0x116   :  { %v180_v5 = vpop.f32.mrb[30].mxu0  ;;  %v358_v6 = vpop.f32.mrb[30].mxu1 }
 0x117   :  { %v206_v8 = vmax.f32 %v178_v63, 0.0  ;;  %v384_v9 = vmax.f32 %v356_v1, 0.0  ;;  %v181_v10 = vadd.f32 %v1467_v0, %v180_v5  ;;  %v359_v11 = vadd.f32 %v1467_v0, %v358_v6  ;;  %v985_v12 = vpop.f32.mrb[31].mxu0  ;;  %v1023_v13 = vpop.f32.mrb[31].mxu1 }
 0x119   :  { %v1529_v14 = vmax.f32 %v206_v8, %v384_v9  ;;  %v207_v16 = vmax.f32 %v181_v10, 0.0  ;;  %v385_v17 = vmax.f32 %v359_v11, 0.0 }
 0x11b   :  { %v1531_v19 = vmax.f32 %v207_v16, %v385_v17 }
 0x11c   :  { %v185_v20 = vpop.f32.mrb[32].mxu0  ;;  %v363_v21 = vpop.f32.mrb[32].mxu1 }
 0x11d   :  { %v186_v23 = vadd.f32 %v1467_v0, %v185_v20  ;;  %v364_v24 = vadd.f32 %v1467_v0, %v363_v21  ;;  %v988_v26 = vpop.f32.mrb[33].mxu0  ;;  %v1026_v27 = vpop.f32.mrb[33].mxu1 }
 0x11e   :  { %v188_v28 = vpop.f32.mrb[34].mxu0  ;;  %v366_v29 = vpop.f32.mrb[34].mxu1 }
 0x11f   :  { %v208_v30 = vmax.f32 %v186_v23, 0.0  ;;  %v386_v31 = vmax.f32 %v364_v24, 0.0  ;;  %v189_v32 = vadd.f32 %v1467_v0, %v188_v28  ;;  %v367_v33 = vadd.f32 %v1467_v0, %v366_v29  ;;  %v989_v34 = vpop.f32.mrb[35].mxu0  ;;  %v1027_v36 = vpop.f32.mrb[35].mxu1 }
 0x121   :  { %v1537_v37 = vmax.f32 %v208_v30, %v386_v31  ;;  %v209_v39 = vmax.f32 %v189_v32, 0.0  ;;  %v387_v41 = vmax.f32 %v367_v33, 0.0 }
 0x123   :  { %v1539_v42 = vmax.f32 %v209_v39, %v387_v41 }
 0x124   :  { %v495_v44 = vpop.f32.mrb[36].mxu0  ;;  %v673_v45 = vpop.f32.mrb[36].mxu1 }
 0x125   :  { %v496_v46 = vadd.f32 %v1467_v0, %v495_v44  ;;  %v674_v47 = vadd.f32 %v1467_v0, %v673_v45  ;;  %v1032_v48 = vpop.f32.mrb[37].mxu0  ;;  %v1070_v49 = vpop.f32.mrb[37].mxu1 }
 0x126   :  { %v498_v50 = vpop.f32.mrb[38].mxu0  ;;  %v676_v51 = vpop.f32.mrb[38].mxu1 }
 0x127   :  { %v566_v52 = vmax.f32 %v496_v46, 0.0  ;;  %v744_v53 = vmax.f32 %v674_v47, 0.0  ;;  %v499_v54 = vadd.f32 %v1467_v0, %v498_v50  ;;  %v677_v56 = vadd.f32 %v1467_v0, %v676_v51  ;;  %v1033_v57 = vpop.f32.mrb[39].mxu0  ;;  %v1071_v60 = vpop.f32.mrb[39].mxu1 }
 0x129   :  { %v762_v62 = vmax.f32 %v566_v52, %v744_v53  ;;  %v567_v63 = vmax.f32 %v499_v54, 0.0  ;;  %v745_v1 = vmax.f32 %v677_v56, 0.0 }
 0x12b   :  { %v780_v2 = vmax.f32 %v1473_v4, %v762_v62  ;;  %v763_v3 = vmax.f32 %v567_v63, %v745_v1 }
 0x12c   :  { %v503_v5 = vpop.f32.mrb[40].mxu0  ;;  %v681_v6 = vpop.f32.mrb[40].mxu1 }
 0x12d   :  { %799 = vst.msk [vmem:[%s1670_s3] sm:$0xff] %vm798_vm4, %v780_v2  ;;  %v781_v8 = vmax.f32 %v1475_v7, %v763_v3  ;;  %v504_v9 = vadd.f32 %v1467_v0, %v503_v5  ;;  %v682_v10 = vadd.f32 %v1467_v0, %v681_v6  ;;  %v1036_v11 = vpop.f32.mrb[41].mxu0  ;;  %v1074_v12 = vpop.f32.mrb[41].mxu1 }
 0x12e   :  { %v506_v13 = vpop.f32.mrb[42].mxu0  ;;  %v684_v16 = vpop.f32.mrb[42].mxu1 }
 0x12f   :  { %800 = vst.msk [vmem:[%s1670_s3 + $0x8] sm:$0xff] %vm798_vm4, %v781_v8  ;;  %v568_v4 = vmax.f32 %v504_v9, 0.0  ;;  %v746_v17 = vmax.f32 %v682_v10, 0.0  ;;  %v507_v20 = vadd.f32 %v1467_v0, %v506_v13  ;;  %v685_v21 = vadd.f32 %v1467_v0, %v684_v16  ;;  %v1037_v7 = vpop.f32.mrb[43].mxu0  ;;  %v1075_v23 = vpop.f32.mrb[43].mxu1 }
 0x131   :  { %v764_v24 = vmax.f32 %v568_v4, %v746_v17  ;;  %v569_v26 = vmax.f32 %v507_v20, 0.0  ;;  %v747_v27 = vmax.f32 %v685_v21, 0.0 }
 0x133   :  { %v782_v28 = vmax.f32 %v1481_v22, %v764_v24  ;;  %v765_v29 = vmax.f32 %v569_v26, %v747_v27 }
 0x134   :  { %v511_v30 = vpop.f32.mrb[44].mxu0  ;;  %v689_v31 = vpop.f32.mrb[44].mxu1 }
 0x135   :  { %801 = vst.msk [vmem:[%s1670_s3 + $0x10] sm:$0xff] %vm798_vm4, %v782_v28  ;;  %v783_v32 = vmax.f32 %v1483_v25, %v765_v29  ;;  %v512_v33 = vadd.f32 %v1467_v0, %v511_v30  ;;  %v690_v34 = vadd.f32 %v1467_v0, %v689_v31  ;;  %v1040_v36 = vpop.f32.mrb[45].mxu0  ;;  %v1078_v39 = vpop.f32.mrb[45].mxu1 }
 0x136   :  { %v514_v41 = vpop.f32.mrb[46].mxu0  ;;  %v692_v44 = vpop.f32.mrb[46].mxu1 }
 0x137   :  { %802 = vst.msk [vmem:[%s1670_s3 + $0x18] sm:$0xff] %vm798_vm4, %v783_v32  ;;  %v570_v22 = vmax.f32 %v512_v33, 0.0  ;;  %v748_v45 = vmax.f32 %v690_v34, 0.0  ;;  %v515_v46 = vadd.f32 %v1467_v0, %v514_v41  ;;  %v693_v47 = vadd.f32 %v1467_v0, %v692_v44  ;;  %v1041_v25 = vpop.f32.mrb[47].mxu0  ;;  %v1079_v48 = vpop.f32.mrb[47].mxu1 }
 0x139   :  { %v766_v49 = vmax.f32 %v570_v22, %v748_v45  ;;  %v571_v50 = vmax.f32 %v515_v46, 0.0  ;;  %v749_v51 = vmax.f32 %v693_v47, 0.0 }
 0x13b   :  { %v784_v52 = vmax.f32 %v1489_v40, %v766_v49  ;;  %v767_v53 = vmax.f32 %v571_v50, %v749_v51 }
 0x13c   :  { %v519_v54 = vpop.f32.mrb[48].mxu0  ;;  %v697_v56 = vpop.f32.mrb[48].mxu1 }
 0x13d   :  { %803 = vst.msk [vmem:[%s1670_s3 + $0x20] sm:$0xff] %vm798_vm4, %v784_v52  ;;  %v785_v57 = vmax.f32 %v1491_v43, %v767_v53  ;;  %v520_v60 = vadd.f32 %v1467_v0, %v519_v54  ;;  %v698_v62 = vadd.f32 %v1467_v0, %v697_v56  ;;  %v1044_v63 = vpop.f32.mrb[49].mxu0  ;;  %v1082_v1 = vpop.f32.mrb[49].mxu1 }
 0x13e   :  { %v522_v2 = vpop.f32.mrb[50].mxu0  ;;  %v700_v3 = vpop.f32.mrb[50].mxu1 }
 0x13f   :  { %804 = vst.msk [vmem:[%s1670_s3 + $0x28] sm:$0xff] %vm798_vm4, %v785_v57  ;;  %v572_v40 = vmax.f32 %v520_v60, 0.0  ;;  %v750_v5 = vmax.f32 %v698_v62, 0.0  ;;  %v523_v6 = vadd.f32 %v1467_v0, %v522_v2  ;;  %v701_v8 = vadd.f32 %v1467_v0, %v700_v3  ;;  %v1045_v43 = vpop.f32.mrb[51].mxu0  ;;  %v1083_v9 = vpop.f32.mrb[51].mxu1 }
 0x141   :  { %v768_v10 = vmax.f32 %v572_v40, %v750_v5  ;;  %v573_v11 = vmax.f32 %v523_v6, 0.0  ;;  %v751_v12 = vmax.f32 %v701_v8, 0.0 }
 0x143   :  { %v786_v13 = vmax.f32 %v1497_v58, %v768_v10  ;;  %v769_v16 = vmax.f32 %v573_v11, %v751_v12 }
 0x144   :  { %v527_v4 = vpop.f32.mrb[52].mxu0  ;;  %v705_v17 = vpop.f32.mrb[52].mxu1 }
 0x145   :  { %805 = vst.msk [vmem:[%s1670_s3 + $0x30] sm:$0xff] %vm798_vm4, %v786_v13  ;;  %v787_v20 = vmax.f32 %v1499_v61, %v769_v16  ;;  %v528_v21 = vadd.f32 %v1467_v0, %v527_v4  ;;  %v706_v7 = vadd.f32 %v1467_v0, %v705_v17  ;;  %v1048_v23 = vpop.f32.mrb[53].mxu0  ;;  %v1086_v24 = vpop.f32.mrb[53].mxu1 }
 0x146   :  { %v530_v26 = vpop.f32.mrb[54].mxu0  ;;  %v708_v27 = vpop.f32.mrb[54].mxu1 }
 0x147   :  { %806 = vst.msk [vmem:[%s1670_s3 + $0x38] sm:$0xff] %vm798_vm4, %v787_v20  ;;  %v574_v58 = vmax.f32 %v528_v21, 0.0  ;;  %v752_v28 = vmax.f32 %v706_v7, 0.0  ;;  %v531_v29 = vadd.f32 %v1467_v0, %v530_v26  ;;  %v709_v30 = vadd.f32 %v1467_v0, %v708_v27  ;;  %v1049_v61 = vpop.f32.mrb[55].mxu0  ;;  %v1087_v31 = vpop.f32.mrb[55].mxu1 }
 0x149   :  { %v770_v32 = vmax.f32 %v574_v58, %v752_v28  ;;  %v575_v33 = vmax.f32 %v531_v29, 0.0  ;;  %v753_v34 = vmax.f32 %v709_v30, 0.0 }
 0x14b   :  { %v788_v36 = vmax.f32 %v1505_v15, %v770_v32  ;;  %v771_v39 = vmax.f32 %v575_v33, %v753_v34 }
 0x14c   :  { %v535_v41 = vpop.f32.mrb[56].mxu0  ;;  %v713_v44 = vpop.f32.mrb[56].mxu1 }
 0x14d   :  { %807 = vst.msk [vmem:[%s1670_s3 + $0x40] sm:$0xff] %vm798_vm4, %v788_v36  ;;  %v789_v22 = vmax.f32 %v1507_v18, %v771_v39  ;;  %v536_v45 = vadd.f32 %v1467_v0, %v535_v41  ;;  %v714_v46 = vadd.f32 %v1467_v0, %v713_v44  ;;  %v1052_v47 = vpop.f32.mrb[57].mxu0  ;;  %v1090_v25 = vpop.f32.mrb[57].mxu1 }
 0x14e   :  { %v538_v48 = vpop.f32.mrb[58].mxu0  ;;  %v716_v49 = vpop.f32.mrb[58].mxu1 }
 0x14f   :  { %808 = vst.msk [vmem:[%s1670_s3 + $0x48] sm:$0xff] %vm798_vm4, %v789_v22  ;;  %v576_v15 = vmax.f32 %v536_v45, 0.0  ;;  %v754_v50 = vmax.f32 %v714_v46, 0.0  ;;  %v539_v51 = vadd.f32 %v1467_v0, %v538_v48  ;;  %v717_v52 = vadd.f32 %v1467_v0, %v716_v49  ;;  %v1053_v18 = vpop.f32.mrb[59].mxu0  ;;  %v1091_v53 = vpop.f32.mrb[59].mxu1 }
 0x151   :  { %v772_v54 = vmax.f32 %v576_v15, %v754_v50  ;;  %v577_v56 = vmax.f32 %v539_v51, 0.0  ;;  %v755_v57 = vmax.f32 %v717_v52, 0.0 }
 0x153   :  { %v790_v60 = vmax.f32 %v1513_v35, %v772_v54  ;;  %v773_v62 = vmax.f32 %v577_v56, %v755_v57 }
 0x154   :  { %v543_v63 = vpop.f32.mrb[60].mxu0  ;;  %v721_v1 = vpop.f32.mrb[60].mxu1 }
 0x155   :  { %809 = vst.msk [vmem:[%s1670_s3 + $0x50] sm:$0xff] %vm798_vm4, %v790_v60  ;;  %v791_v2 = vmax.f32 %v1515_v38, %v773_v62  ;;  %v544_v3 = vadd.f32 %v1467_v0, %v543_v63  ;;  %v722_v40 = vadd.f32 %v1467_v0, %v721_v1  ;;  %v1056_v5 = vpop.f32.mrb[61].mxu0  ;;  %v1094_v6 = vpop.f32.mrb[61].mxu1 }
 0x156   :  { %v546_v8 = vpop.f32.mrb[62].mxu0  ;;  %v724_v43 = vpop.f32.mrb[62].mxu1 }
 0x157   :  { %810 = vst.msk [vmem:[%s1670_s3 + $0x58] sm:$0xff] %vm798_vm4, %v791_v2  ;;  %v578_v35 = vmax.f32 %v544_v3, 0.0  ;;  %v756_v9 = vmax.f32 %v722_v40, 0.0  ;;  %v547_v10 = vadd.f32 %v1467_v0, %v546_v8  ;;  %v725_v11 = vadd.f32 %v1467_v0, %v724_v43  ;;  %v1057_v38 = vpop.f32.mrb[63].mxu0  ;;  %v1095_v12 = vpop.f32.mrb[63].mxu1 }
 0x159   :  { %v774_v13 = vmax.f32 %v578_v35, %v756_v9  ;;  %v579_v16 = vmax.f32 %v547_v10, 0.0  ;;  %v757_v4 = vmax.f32 %v725_v11, 0.0 }
 0x15b   :  { %v792_v17 = vmax.f32 %v1521_v55, %v774_v13  ;;  %v775_v20 = vmax.f32 %v579_v16, %v757_v4 }
 0x15c   :  { %v551_v21 = vpop.f32.mrb[64].mxu0  ;;  %v729_v7 = vpop.f32.mrb[64].mxu1 }
 0x15d   :  { %811 = vst.msk [vmem:[%s1670_s3 + $0x60] sm:$0xff] %vm798_vm4, %v792_v17  ;;  %v793_v23 = vmax.f32 %v1523_v59, %v775_v20  ;;  %v552_v24 = vadd.f32 %v1467_v0, %v551_v21  ;;  %v730_v26 = vadd.f32 %v1467_v0, %v729_v7  ;;  %v1060_v27 = vpop.f32.mrb[65].mxu0  ;;  %v1098_v58 = vpop.f32.mrb[65].mxu1 }
 0x15e   :  { %v554_v28 = vpop.f32.mrb[66].mxu0  ;;  %v732_v29 = vpop.f32.mrb[66].mxu1 }
 0x15f   :  { %812 = vst.msk [vmem:[%s1670_s3 + $0x68] sm:$0xff] %vm798_vm4, %v793_v23  ;;  %v580_v55 = vmax.f32 %v552_v24, 0.0  ;;  %v758_v30 = vmax.f32 %v730_v26, 0.0  ;;  %v555_v61 = vadd.f32 %v1467_v0, %v554_v28  ;;  %v733_v31 = vadd.f32 %v1467_v0, %v732_v29  ;;  %v1061_v59 = vpop.f32.mrb[67].mxu0  ;;  %v1099_v32 = vpop.f32.mrb[67].mxu1 }
 0x161   :  { %v776_v33 = vmax.f32 %v580_v55, %v758_v30  ;;  %v581_v34 = vmax.f32 %v555_v61, 0.0  ;;  %v759_v36 = vmax.f32 %v733_v31, 0.0 }
 0x163   :  { %v794_v39 = vmax.f32 %v1529_v14, %v776_v33  ;;  %v777_v41 = vmax.f32 %v581_v34, %v759_v36 }
 0x164   :  { %v559_v44 = vpop.f32.mrb[68].mxu0  ;;  %v737_v22 = vpop.f32.mrb[68].mxu1 }
 0x165   :  { %813 = vst.msk [vmem:[%s1670_s3 + $0x70] sm:$0xff] %vm798_vm4, %v794_v39  ;;  %v795_v45 = vmax.f32 %v1531_v19, %v777_v41  ;;  %v560_v46 = vadd.f32 %v1467_v0, %v559_v44  ;;  %v738_v47 = vadd.f32 %v1467_v0, %v737_v22  ;;  %v1064_v25 = vpop.f32.mrb[69].mxu0  ;;  %v1102_v48 = vpop.f32.mrb[69].mxu1 }
 0x166   :  { %v562_v49 = vpop.f32.mrb[70].mxu0  ;;  %v740_v15 = vpop.f32.mrb[70].mxu1 }
 0x167   :  { %814 = vst.msk [vmem:[%s1670_s3 + $0x78] sm:$0xff] %vm798_vm4, %v795_v45  ;;  %v582_v14 = vmax.f32 %v560_v46, 0.0  ;;  %v760_v50 = vmax.f32 %v738_v47, 0.0  ;;  %v563_v51 = vadd.f32 %v1467_v0, %v562_v49  ;;  %v741_v52 = vadd.f32 %v1467_v0, %v740_v15  ;;  %v1065_v19 = vpop.f32.mrb[71].mxu0  ;;  %v1103_v18 = vpop.f32.mrb[71].mxu1 }
 0x169   :  { %v778_v53 = vmax.f32 %v582_v14, %v760_v50  ;;  %v583_v54 = vmax.f32 %v563_v51, 0.0  ;;  %v761_v56 = vmax.f32 %v741_v52, 0.0 }
 0x16b   :  { %v796_v57 = vmax.f32 %v1537_v37, %v778_v53  ;;  %v779_v60 = vmax.f32 %v583_v54, %v761_v56 }
 0x16d   :  { %815 = vst.msk [vmem:[%s1670_s3 + $0x80] sm:$0xff] %vm798_vm4, %v796_v57  ;;  %v797_v62 = vmax.f32 %v1539_v42, %v779_v60 }
 0x16f   :  { %816 = vst.msk [vmem:[%s1670_s3 + $0x88] sm:$0xff] %vm798_vm4, %v797_v62 }

// kernel: wsal_forward.5
= control target key start
LH: loop header
LB: loop body
LE: loop exit
PB: predicated region body
PF: predicated region fallthrough
CT: control target
= control target key end

     0   :  { %s1635_s0 = inlined_call_operand.vmem [shape: f32[4,128], index: 0, kind: input, shape index: {}]   ;;  %s1636_s1 = inlined_call_operand.vmem [shape: f32[128,120], index: 1, kind: input, shape index: {}]   ;;  %s1637_s2 = inlined_call_operand.vmem [shape: f32[1,120], index: 2, kind: input, shape index: {}]   ;;  %s1638_s3 = inlined_call_operand.vmem [shape: f32[120,84], index: 3, kind: input, shape index: {}]   ;;  %s1639_s4 = inlined_call_operand.vmem [shape: f32[1,84], index: 4, kind: input, shape index: {}]   ;;  %s1640_s5 = inlined_call_operand.vmem [shape: f32[84,10], index: 5, kind: input, shape index: {}]   ;;  %s1641_s6 = inlined_call_operand.vmem [shape: f32[1,10], index: 6, kind: input, shape index: {}]   ;;  %s1642_s7 = inlined_call_operand.vmem [shape: f32[10,200], index: 7, kind: input, shape index: {}]   ;;  %s1643_s8 = inlined_call_operand.vmem [shape: f32[10,200], index: 8, kind: input, shape index: {}]   ;;  %s1644_s9 = inlined_call_operand.vmem [shape: f32[1,200], index: 9, kind: input, shape index: {}]   ;;  %s1645_s10 = inlined_call_operand.vmem [shape: f32[200,84], index: 10, kind: input, shape index: {}]   ;;  %s1646_s11 = inlined_call_operand.vmem [shape: f32[1,84], index: 11, kind: input, shape index: {}]   ;;  %s1647_s12 = inlined_call_operand.vmem [shape: f32[84,1], index: 12, kind: input, shape index: {}]   ;;  %s1648_s13 = inlined_call_operand.<no memory space> [shape: f32[1,1], index: 13, kind: input, shape index: {}]   ;;  %s1649_s14 = inlined_call_operand.hbm [shape: f32[2,10], index: 14, kind: output, shape index: {0}]   ;;  %s1650_s15 = inlined_call_operand.hbm [shape: f32[2,10], index: 15, kind: output, shape index: {1}]   ;;  %s1651_s16 = inlined_call_operand.vmem [shape: f32[2,1], index: 16, kind: output, shape index: {2}]  }
   0x1   :  { %1652 = sst [smem:[#allocation9_spill]] %s1635_s0  ;;  %v22_v0 = vstv %s1648_s13 }
   0x2   :  { %23 = vst [vmem:[#allocation2] sm:$0x1] %v22_v0 }
   0x3   :  { %24 = vsyncpa [#allocation4], 0  ;;  %v55_v1 = vld [vmem:[%s1636_s1] sm:$0xff]  ;;  %v56_v2 = vld [vmem:[%s1636_s1 + $0x8] sm:$0xff]  ;;  %v1167_v4 = vmov 0.0|0.0   ;;  %vm1168_vm0 = vmmov 0  }
   0x4   :  { %v57_v3 = vld [vmem:[%s1636_s1 + $0x10] sm:$0xff]  ;;  %980 = vmatprep.subr.bf16.mxu0 %v1167_v4  ;;  %v981_v5 = vpack.c.bf16 %v56_v2, %v55_v1  ;;  %v58_v6 = vld [vmem:[%s1636_s1 + $0x18] sm:$0xff]  ;;  %v1169_v7 = vmov 0.0   ;;  %1004 = vmatprep.subr.bf16.mxu1 %v1167_v4  ;;  %v59_v9 = vld [vmem:[%s1636_s1 + $0x20] sm:$0xff] }
   0x5   :  { %894 = vmatprep.mubr.msk.f32.mxu0 %vm1168_vm0, %v1169_v7  ;;  %927 = vmatprep.mubr.msk.f32.mxu1 %vm1168_vm0, %v1169_v7  ;;  %v984_v8 = vpack.c.bf16 %v58_v6, %v57_v3  ;;  %v60_v10 = vld [vmem:[%s1636_s1 + $0x28] sm:$0xff]  ;;  %v149_v11 = vld [vmem:[%s1638_s3] sm:$0xff]  ;;  %v151_v13 = vld [vmem:[%s1638_s3 + $0x10] sm:$0xff] }
   0x6   :  { %982 = vmatpush3.bf16.msra.mxu0 %v981_v5  ;;  %v150_v12 = vld [vmem:[%s1638_s3 + $0x8] sm:$0xff]  ;;  %v152_v14 = vld [vmem:[%s1638_s3 + $0x18] sm:$0xff]  ;;  %v987_v15 = vpack.c.bf16 %v60_v10, %v59_v9  ;;  %v61_v17 = vld [vmem:[%s1636_s1 + $0x30] sm:$0xff] }
   0x7   :  { %983 = vmatprep.subr.bf16.mxu0 %v1167_v4  ;;  %v1005_v16 = vpack.c.bf16 %v150_v12, %v149_v11  ;;  %v62_v18 = vld [vmem:[%s1636_s1 + $0x38] sm:$0xff]  ;;  %v1008_v19 = vpack.c.bf16 %v152_v14, %v151_v13  ;;  %v153_v20 = vld [vmem:[%s1638_s3 + $0x20] sm:$0xff]  ;;  %v154_v21 = vld [vmem:[%s1638_s3 + $0x28] sm:$0xff] }
   0x9   :  { %1006 = vmatpush3.bf16.msra.mxu1 %v1005_v16 }
   0xa   :  { %985 = vmatpush3.bf16.msra.mxu0 %v984_v8  ;;  %1007 = vmatprep.subr.bf16.mxu1 %v1167_v4 }
   0xb   :  { %986 = vmatprep.subr.bf16.mxu0 %v1167_v4 }
   0xc   :  { %25 = vsyncpa [#allocation6], 0  ;;  %v990_v22 = vpack.c.bf16 %v62_v18, %v61_v17  ;;  %v63_v23 = vld [vmem:[%s1636_s1 + $0x40] sm:$0xff]  ;;  %v64_v24 = vld [vmem:[%s1636_s1 + $0x48] sm:$0xff]  ;;  %v1011_v25 = vpack.c.bf16 %v154_v21, %v153_v20  ;;  %s1653_s17 = sld [smem:[#allocation9_spill]]  ;;  %vm171_vm1 = vcmask 982016  }
   0xd   :  { %1009 = vmatpush3.bf16.msra.mxu1 %v1008_v19  ;;  %v155_v26 = vld [vmem:[%s1638_s3 + $0x30] sm:$0xff]  ;;  %v156_v27 = vld [vmem:[%s1638_s3 + $0x38] sm:$0xff]  ;;  %v993_v28 = vpack.c.bf16 %v64_v24, %v63_v23  ;;  %v157_v32 = vld [vmem:[%s1638_s3 + $0x40] sm:$0xff]  ;;  %vm268_vm2 = vcmask 1043456   ;;  %vm264_vm3 = vcmask 687104   ;;  %vm342_vm4 = vcmask 76800  }
   0xe   :  { %988 = vmatpush3.bf16.msra.mxu0 %v987_v15  ;;  %1010 = vmatprep.subr.bf16.mxu1 %v1167_v4  ;;  %v65_v29 = vld [vmem:[%s1636_s1 + $0x50] sm:$0xff]  ;;  %v66_v30 = vld [vmem:[%s1636_s1 + $0x58] sm:$0xff]  ;;  %v1014_v31 = vpack.c.bf16 %v156_v27, %v155_v26  ;;  %v158_v33 = vld [vmem:[%s1638_s3 + $0x48] sm:$0xff]  ;;  %vm371_vm5 = vcmask 1041408   ;;  %vm1170_vm6 = vmmov 1   ;;  %vm354_vm8 = vcmask 74752  }
   0xf   :  { %989 = vmatprep.subr.bf16.mxu0 %v1167_v4  ;;  %v996_v34 = vpack.c.bf16 %v66_v30, %v65_v29  ;;  %v67_v35 = vld [vmem:[%s1636_s1 + $0x60] sm:$0xff]  ;;  %v68_v36 = vld [vmem:[%s1636_s1 + $0x68] sm:$0xff]  ;;  %v1017_v37 = vpack.c.bf16 %v158_v33, %v157_v32  ;;  %v159_v38 = vld [vmem:[%s1638_s3 + $0x50] sm:$0xff]  ;;  %vm356_vm9 = vcmask 76802   ;;  %vm368_vm10 = vcmask 80896   ;;  %s1171_s28 = smov [#allocation3]  }
  0x10   :  { %v160_v39 = vld [vmem:[%s1638_s3 + $0x58] sm:$0xff]  ;;  %v999_v40 = vpack.c.bf16 %v68_v36, %v67_v35  ;;  %v69_v41 = vld [vmem:[%s1636_s1 + $0x70] sm:$0xff]  ;;  %v161_v46 = vld [vmem:[%s1638_s3 + $0x60] sm:$0xff]  ;;  %vm576_vm11 = vcmask 588800   ;;  %s1172_s29 = smov [#allocation5]  }
  0x11   :  { %1012 = vmatpush3.bf16.msra.mxu1 %v1011_v25  ;;  %v70_v42 = vld [vmem:[%s1636_s1 + $0x78] sm:$0xff]  ;;  %v1020_v43 = vpack.c.bf16 %v160_v39, %v159_v38  ;;  %v162_v47 = vld [vmem:[%s1638_s3 + $0x68] sm:$0xff]  ;;  %v163_v49 = vld [vmem:[%s1638_s3 + $0x70] sm:$0xff]  ;;  %s762_s3 = sshll.u32 %s1171_s28, 4  ;;  %s772_s13 = sshll.u32 %s1172_s29, 4  ;;  %s763_s3 = int_to_ptr.vmem [resolvable:$true] %s762_s3  ;;  %s773_s13 = int_to_ptr.vmem [resolvable:$true] %s772_s13 }
  0x12   :  { %991 = vmatpush3.bf16.msra.mxu0 %v990_v22  ;;  %1013 = vmatprep.subr.bf16.mxu1 %v1167_v4  ;;  %v1002_v44 = vpack.c.bf16 %v70_v42, %v69_v41  ;;  %v54_v45 = vld [vmem:[%s1653_s17] sm:$0xf]  ;;  %v1023_v48 = vpack.c.bf16 %v162_v47, %v161_v46  ;;  %v247_v52 = vld [vmem:[%s1640_s5 + $0x8] sm:$0xff]  ;;  %v248_v58 = vld [vmem:[%s1640_s5 + $0x10] sm:$0xff]  ;;  %p1124_p1 = scmp.lt.s32.totalorder %s763_s3, %s763_s3 }
  0x13   :  { %992 = vmatprep.subr.bf16.mxu0 %v1167_v4  ;;  %v788_v50 = vld [vmem:[%s1637_s2] ss:$0 sm:$0xff]  ;;  %v249_v59 = vld [vmem:[%s1640_s5 + $0x18] sm:$0xff]  ;;  %v251_v62 = vld [vmem:[%s1640_s5 + $0x28] sm:$0xff] }
  0x14   :  { %v246_v51 = vld [vmem:[%s1640_s5] sm:$0xff]  ;;  %v1029_v60 = vpack.c.bf16 %v249_v59, %v248_v58  ;;  %v252_v0 = vld [vmem:[%s1640_s5 + $0x30] sm:$0xff]  ;;  %v253_v1 = vld [vmem:[%s1640_s5 + $0x38] sm:$0xff] }
  0x15   :  { %1015 = vmatpush3.bf16.msra.mxu1 %v1014_v31  ;;  %v1026_v56 = vpack.c.bf16 %v247_v52, %v246_v51  ;;  %v250_v61 = vld [vmem:[%s1640_s5 + $0x20] sm:$0xff]  ;;  %v1035_v2 = vpack.c.bf16 %v253_v1, %v252_v0  ;;  %v255_v5 = vld [vmem:[%s1640_s5 + $0x48] sm:$0xff]  ;;  %v256_v8 = vld [vmem:[%s1640_s5 + $0x50] sm:$0xf] }
  0x16   :  { %994 = vmatpush3.bf16.msra.mxu0 %v993_v28  ;;  %1016 = vmatprep.subr.bf16.mxu1 %v1167_v4  ;;  %v1032_v63 = vpack.c.bf16 %v251_v62, %v250_v61  ;;  %v254_v3 = vld [vmem:[%s1640_s5 + $0x40] sm:$0xff]  ;;  %v363_v24 = vld [vmem:[%s1643_s8 + $0x8] sm:$0xff]  ;;  %v365_v25 = vld [vmem:[%s1643_s8 + $0x18] sm:$0x3] }
  0x17   :  { %995 = vmatprep.subr.bf16.mxu0 %v1167_v4  ;;  %v1038_v6 = vpack.c.bf16 %v255_v5, %v254_v3  ;;  %v789_v9 = vld [vmem:[%s1639_s4] ss:$0 sm:$0xff]  ;;  %v1040_v26 = vpack.c.bf16 %v365_v25, %v363_v24  ;;  %v364_v28 = vld [vmem:[%s1643_s8 + $0x10] sm:$0x3]  ;;  %vm1446_vm7 = vmpackc.low %vm371_vm5, %vm1170_vm6  ;;  %s1119_s4 = scalar_lea.vmem %s763_s3, 32 }
  0x18   :  { %v791_v14 = vld [vmem:[%s1641_s6] ss:$0 sm:$0xff]  ;;  %v359_v31 = vld [vmem:[%s1642_s7 + $0x8] sm:$0xff]  ;;  %v361_v32 = vld [vmem:[%s1642_s7 + $0x18] sm:$0x3]  ;;  %p1120_p0 = scmp.ne.s32.totalorder %s763_s3, %s1119_s4  ;;  %p1125_p2 = scmp.lt.s32.totalorder %s1119_s4, %s1119_s4 }
  0x19   :  { %1018 = vmatpush3.bf16.msra.mxu1 %v1017_v37  ;;  %v362_v27 = vld [vmem:[%s1643_s8] sm:$0xff]  ;;  %v1046_v33 = vpack.c.bf16 %v361_v32, %v359_v31  ;;  %v545_v35 = vld [vmem:[%s1645_s10 + $0x8] sm:$0xff]  ;;  %v546_v36 = vld [vmem:[%s1645_s10 + $0x10] sm:$0xff] }
  0x1a   :  { %997 = vmatpush3.bf16.msra.mxu0 %v996_v34  ;;  %1019 = vmatprep.subr.bf16.mxu1 %v1167_v4  ;;  %v1043_v30 = vpack.c.bf16 %v364_v28, %v362_v27  ;;  %v544_v34 = vld [vmem:[%s1645_s10] sm:$0xff]  ;;  %v547_v38 = vld [vmem:[%s1645_s10 + $0x18] sm:$0xff]  ;;  %v549_v41 = vld [vmem:[%s1645_s10 + $0x28] sm:$0xff]  ;;  %v530_v28 = vlaneseq  ;;  %p1126_p3 = por %p1125_p2, %p1124_p1 }
  0x1b   :  { %998 = vmatprep.subr.bf16.mxu0 %v1167_v4  ;;  %v1053_v37 = vpack.c.bf16 %v545_v35, %v544_v34  ;;  %v1056_v39 = vpack.c.bf16 %v547_v38, %v546_v36  ;;  %v552_v46 = vld [vmem:[%s1645_s10 + $0x40] sm:$0xff]  ;;  %v553_v47 = vld [vmem:[%s1645_s10 + $0x48] sm:$0xff]  ;;  %v562_v61 = vld [vmem:[%s1645_s10 + $0x90] sm:$0xff] }
  0x1c   :  { %v556_v52 = vld [vmem:[%s1645_s10 + $0x60] sm:$0xff]  ;;  %v561_v59 = vld [vmem:[%s1645_s10 + $0x88] sm:$0xff]  ;;  %v563_v62 = vld [vmem:[%s1645_s10 + $0x98] sm:$0xff]  ;;  %v531_v29 = vshrl.u32 %v530_v28, 7  ;;  %p1127_p4 = pnand %p1126_p3, %p1120_p0 }
  0x1d   :  { %1021 = vmatpush3.bf16.msra.mxu1 %v1020_v43  ;;  %v550_v43 = vld [vmem:[%s1645_s10 + $0x30] sm:$0xff]  ;;  %v560_v58 = vld [vmem:[%s1645_s10 + $0x80] sm:$0xff]  ;;  %v565_v1 = vld [vmem:[%s1645_s10 + $0xa8] sm:$0xff] }
  0x1e   :  { %1000 = vmatpush3.bf16.msra.mxu0 %v999_v40  ;;  %1022 = vmatprep.subr.bf16.mxu1 %v1167_v4  ;;  %v548_v40 = vld [vmem:[%s1645_s10 + $0x20] sm:$0xff]  ;;  %v657_v25 = vld [vmem:[%s1647_s12 + $0x30] sm:$0xff]  ;;  %v536_v32 = vsub.s32 1, %v531_v29 }
  0x1f   :  { %1001 = vmatprep.subr.bf16.mxu0 %v1167_v4  ;;  %v1059_v42 = vpack.c.bf16 %v549_v41, %v548_v40  ;;  %v564_v0 = vld [vmem:[%s1645_s10 + $0xa0] sm:$0xff]  ;;  %v660_v41 = vld [vmem:[%s1647_s12 + $0x48] sm:$0xff] }
  0x20   :  { %v358_v5 = vld [vmem:[%s1642_s7] sm:$0xff] }
  0x21   :  { %1024 = vmatpush3.bf16.msra.mxu1 %v1023_v48  ;;  %v1065_v48 = vpack.c.bf16 %v553_v47, %v552_v46  ;;  %v528_v31 = vld [vmem:[%s1644_s9] sm:$0x3] }
  0x22   :  { %1003 = vmatpush3.bf16.msra.mxu0 %v1002_v44  ;;  %925 = vmatprep.subr.mxu1 %v1169_v7  ;;  %v551_v44 = vld [vmem:[%s1645_s10 + $0x38] sm:$0xff]  ;;  %v537_v34 = vrot.slane %v528_v31, %v536_v32 }
  0x23   :  { %1052 = vmatprep.subr.bf16.mxu0 %v1167_v4 }
  0x25   :  { %895 = vmatmul.mubr.f32.vlgmr.msra.gmra.mrb[0].mxu0 %v54_v45  ;;  %926 = vmatpush3.msra.mxu1 %v163_v49  ;;  %v1062_v45 = vpack.c.bf16 %v551_v44, %v550_v43  ;;  %v554_v49 = vld [vmem:[%s1645_s10 + $0x50] sm:$0xff]  ;;  %v800_v44 = vld [vmem:[%s1646_s11] ss:$0 sm:$0xff] }
  0x26   :  { %1025 = vmatprep.subr.bf16.mxu1 %v1167_v4  ;;  %1054 = vmatpush1.bf16.msra.mxu0 %v1053_v37  ;;  %v661_v43 = vld [vmem:[%s1647_s12 + $0x50] sm:$0xf] }
  0x27   :  { %1055 = vmatprep.subr.bf16.mxu0 %v1167_v4 }
  0x2a   :  { %1057 = vmatpush1.bf16.msra.mxu0 %v1056_v39 }
  0x2b   :  { %1058 = vmatprep.subr.bf16.mxu0 %v1167_v4 }
  0x2e   :  { %1060 = vmatpush1.bf16.msra.mxu0 %v1059_v42 }
  0x2f   :  { %1061 = vmatprep.subr.bf16.mxu0 %v1167_v4 }
  0x32   :  { %1063 = vmatpush1.bf16.msra.mxu0 %v1062_v45 }
  0x33   :  { %1064 = vmatprep.subr.bf16.mxu0 %v1167_v4 }
  0x36   :  { %1066 = vmatpush1.bf16.msra.mxu0 %v1065_v48 }
  0x37   :  { %1067 = vmatprep.subr.bf16.mxu0 %v1167_v4 }
  0xf8   :  { %v144_v53 = vpop.f32.mrb[0].mxu0 }
  0xf9   :  { %v145_v54 = vadd.f32 %v788_v50, %v144_v53  ;;  %v896_v55 = vpop.f32.mrb[1].mxu0  ;;  %v555_v50 = vld [vmem:[%s1645_s10 + $0x58] sm:$0xff]  ;;  %v557_v53 = vld [vmem:[%s1645_s10 + $0x68] sm:$0xff] }
  0xfa   :  { %v1068_v51 = vpack.c.bf16 %v555_v50, %v554_v49  ;;  %v558_v55 = vld [vmem:[%s1645_s10 + $0x70] sm:$0xff] }
  0xfb   :  { %v148_v57 = vmax.f32 %v145_v54, 0.0  ;;  %v1071_v54 = vpack.c.bf16 %v557_v53, %v556_v52 }
  0xfc   :  { %1069 = vmatpush1.bf16.msra.mxu0 %v1068_v51 }
  0xfd   :  { %928 = vmatmul.mubr.msk.f32.vlgmr.msra.gmra.mrb[0].mxu1 %vm171_vm1, %v148_v57  ;;  %1070 = vmatprep.subr.bf16.mxu0 %v1167_v4 }
  0xfe   :  { %1027 = vmatpush3.bf16.msra.mxu1 %v1026_v56  ;;  %952 = vmatprep.mubr.msk.f32.mxu1 %vm1168_vm0, %v1169_v7  ;;  %v559_v56 = vld [vmem:[%s1645_s10 + $0x78] sm:$0xff] }
  0xff   :  { %1028 = vmatprep.subr.bf16.mxu1 %v1167_v4  ;;  %v1074_v57 = vpack.c.bf16 %v559_v56, %v558_v55 }
 0x100   :  { %1072 = vmatpush1.bf16.msra.mxu0 %v1071_v54 }
 0x101   :  { %1073 = vmatprep.subr.bf16.mxu0 %v1167_v4 }
 0x102   :  { %1030 = vmatpush3.bf16.msra.mxu1 %v1029_v60  ;;  %v1077_v60 = vpack.c.bf16 %v561_v59, %v560_v58 }
 0x103   :  { %1031 = vmatprep.subr.bf16.mxu1 %v1167_v4 }
 0x104   :  { %1075 = vmatpush1.bf16.msra.mxu0 %v1074_v57 }
 0x105   :  { %1076 = vmatprep.subr.bf16.mxu0 %v1167_v4 }
 0x106   :  { %1033 = vmatpush3.bf16.msra.mxu1 %v1032_v63  ;;  %v1080_v63 = vpack.c.bf16 %v563_v62, %v562_v61 }
 0x107   :  { %1034 = vmatprep.subr.bf16.mxu1 %v1167_v4 }
 0x108   :  { %1078 = vmatpush1.bf16.msra.mxu0 %v1077_v60 }
 0x109   :  { %1079 = vmatprep.subr.bf16.mxu0 %v1167_v4 }
 0x10a   :  { %1036 = vmatpush3.bf16.msra.mxu1 %v1035_v2  ;;  %v1083_v2 = vpack.c.bf16 %v565_v1, %v564_v0 }
 0x10b   :  { %1037 = vmatprep.subr.bf16.mxu1 %v1167_v4 }
 0x10c   :  { %1081 = vmatpush1.bf16.msra.mxu0 %v1080_v63 }
 0x10d   :  { %1082 = vmatprep.subr.bf16.mxu0 %v1167_v4 }
 0x10e   :  { %1039 = vmatpush3.bf16.msra.mxu1 %v1038_v6  ;;  %v360_v6 = vld [vmem:[%s1642_s7 + $0x10] sm:$0x3] }
 0x10f   :  { %950 = vmatprep.subr.mxu1 %v1169_v7 }
 0x110   :  { %1084 = vmatpush1.bf16.msra.mxu0 %v1083_v2 }
 0x111   :  { %1085 = vmatprep.subr.bf16.mxu0 %v1167_v4 }
 0x112   :  { %951 = vmatpush3.msk.msra.mxu1 %vm268_vm2, %v256_v8 }
 0x113   :  { %1042 = vmatprep.subr.msk.bf16.mxu1 %vm1446_vm7, %v1040_v26  ;;  %v658_v26 = vld [vmem:[%s1647_s12 + $0x38] sm:$0xff] }
 0x114   :  { %v1098_v27 = vpack.c.bf16 %v658_v26, %v657_v25 }
 0x1d0   :  { %v241_v10 = vpop.f32.mrb[0].mxu1 }
 0x1d1   :  { %v242_v11 = vadd.f32 %v789_v9, %v241_v10  ;;  %v929_v12 = vpop.f32.mrb[1].mxu1  ;;  %v1049_v10 = vpack.c.bf16 %v360_v6, %v358_v5 }
 0x1d2   :  { %v566_v12 = vld [vmem:[%s1645_s10 + $0xb0] sm:$0xff] }
 0x1d3   :  { %v245_v13 = vmax.f32 %v242_v11, 0.0 }
 0x1d5   :  { %953 = vmatmul.mubr.msk.f32.vlgmr.msra.gmra.mrb[2].mxu1 %vm264_vm3, %v245_v13  ;;  %v567_v13 = vld [vmem:[%s1645_s10 + $0xb8] sm:$0xff] }
 0x1d6   :  { %442 = vmatprep.mubr.f32.mxu1 %v1169_v7  ;;  %1045 = vmatpush1.bf16.msk.msra.mxu1 %vm1446_vm7, %v1043_v30  ;;  %v532_v30 = vsub.s32 0, %v531_v29 }
 0x1d7   :  { %1048 = vmatprep.subr.msk.bf16.mxu1 %vm1446_vm7, %v1046_v33 }
 0x1d8   :  { %v533_v33 = vrot.slane %v528_v31, %v532_v30 }
 0x2a8   :  { %v338_v15 = vpop.f32.mrb[2].mxu1 }
 0x2a9   :  { %v339_v16 = vadd.f32 %v791_v14, %v338_v15  ;;  %v954_v17 = vpop.f32.mrb[3].mxu1  ;;  %v1086_v14 = vpack.c.bf16 %v567_v13, %v566_v12  ;;  %v568_v15 = vld [vmem:[%s1645_s10 + $0xc0] sm:$0xff] }
 0x2aa   :  { %v652_v17 = vld [vmem:[%s1647_s12 + $0x8] sm:$0xff] }
 0x2ab   :  { %v343_v18 = vsel %vm342_vm4, %v339_v16, -inf  ;;  %1087 = vmatpush1.bf16.msra.mxu0 %v1086_v14 }
 0x2ac   :  { %344 = vmax.xlane.f32.xlu0 %v343_v18  ;;  %628 = vmatprep.subr.mxu0 %v1169_v7  ;;  %v653_v18 = vld [vmem:[%s1647_s12 + $0x10] sm:$0xff] }
 0x2af   :  { %629 = vmatpush1.msra.mxu0 %v568_v15 }
 0x339   :  { %v345_v19 = vpop.xlane.xlu0 %344 }
 0x33a   :  { %v346_v20 = vsub.f32 %v339_v16, %v345_v19  ;;  %v651_v16 = vld [vmem:[%s1647_s12] sm:$0xff] }
 0x33b   :  { %v1089_v19 = vpack.c.bf16 %v652_v17, %v651_v16 }
 0x33c   :  { %v347_v21 = vmul.f32 1.442695, %v346_v20  ;;  %v654_v20 = vld [vmem:[%s1647_s12 + $0x18] sm:$0xff] }
 0x33e   :  { %1111 = vpow2.f32 %v347_v21  ;;  %v1092_v21 = vpack.c.bf16 %v654_v20, %v653_v18 }
 0x348   :  { %v1431_v22 = vpop.eup %1111 }
 0x349   :  { %v349_v23 = vsel %vm342_vm4, %v1431_v22, 0.0 }
 0x34a   :  { %350 = vadd.xlane.f32.xlu0 %v349_v23  ;;  %v656_v23 = vld [vmem:[%s1647_s12 + $0x28] sm:$0xff] }
 0x3d7   :  { %v351_v3 = vpop.xlane.xlu0 %350 }
 0x3d8   :  { %1113 = vrcp.f32 %v351_v3 }
 0x3e2   :  { %v1114_v8 = vpop.eup %1113 }
 0x3e3   :  { %v353_v9 = vmul.f32 %v1114_v8, %v1431_v22  ;;  %v655_v22 = vld [vmem:[%s1647_s12 + $0x20] sm:$0xff] }
 0x3e4   :  { %v1095_v24 = vpack.c.bf16 %v656_v23, %v655_v22 }
 0x3e5   :  { %v367_v11 = vrot.slane %v353_v9, 2  ;;  %355 = vst.msk [vmem:[#allocation3] sm:$0x3] %vm354_vm8, %v353_v9 }
 0x3e6   :  { %357 = vst.msk [vmem:[#allocation5 - $0x2] sm:$0xc] %vm356_vm9, %v353_v9 }
 0x3e7   :  { %796 = vmatmul.mubr.msk.f32.vlgmr.msra.gmra.mrb[4].mxu1 %vm368_vm10, %v367_v11 }
 0x3e8   :  { %1051 = vmatpush1.bf16.msk.msra.mxu1 %vm1446_vm7, %v1049_v10  ;;  %521 = vmatprep.mubr.f32.mxu1 %v1169_v7 }
 0x3e9   :  { %1088 = vmatprep.subr.bf16.mxu1 %v1167_v4 }
 0x3ef   :  { %799 = vmatmul.mubr.msk.f32.vlgmr.msra.gmra.mrb[4].mxu1 %vm368_vm10, %v353_v9 }
 0x3f0   :  { %977 = vmatprep.mubr.msk.f32.mxu1 %vm1168_vm0, %v1169_v7  ;;  %1090 = vmatpush3.bf16.msra.mxu1 %v1089_v19 }
 0x3f1   :  { %1091 = vmatprep.subr.bf16.mxu1 %v1167_v4 }
 0x3f4   :  { %1093 = vmatpush3.bf16.msra.mxu1 %v1092_v21 }
 0x3f5   :  { %1094 = vmatprep.subr.bf16.mxu1 %v1167_v4 }
 0x3f8   :  { %1096 = vmatpush3.bf16.msra.mxu1 %v1095_v24 }
 0x3f9   :  { %1097 = vmatprep.subr.bf16.mxu1 %v1167_v4 }
 0x3fc   :  { %1099 = vmatpush3.bf16.msra.mxu1 %v1098_v27 }
 0x3fd   :  { %1100 = vmatprep.subr.bf16.mxu1 %v1167_v4  ;;  %v659_v4 = vld [vmem:[%s1647_s12 + $0x40] sm:$0xff] }
 0x3fe   :  { %v1101_v42 = vpack.c.bf16 %v660_v41, %v659_v4 }
 0x400   :  { %1102 = vmatpush3.bf16.msra.mxu1 %v1101_v42 }
 0x401   :  { %975 = vmatprep.subr.mxu1 %v1169_v7 }
 0x404   :  { %976 = vmatpush3.msk.msra.mxu1 %vm268_vm2, %v661_v43 }
 0x4c2   :  { %v523_v35 = vpop.f32.mrb[4].mxu1 }
 0x4c3   :  { %v540_v36 = vadd.f32 %v533_v33, %v523_v35  ;;  %v525_v37 = vpop.f32.mrb[5].mxu1 }
 0x4c4   :  { %v541_v38 = vadd.f32 %v537_v34, %v525_v37 }
 0x4c5   :  { %v542_v40 = vmax.f32 %v540_v36, 0.0 }
 0x4c6   :  { %v543_v39 = vmax.f32 %v541_v38, 0.0 }
 0x4c8   :  { %801 = vmatprep.mubr.msk.f32.mxu0 %vm576_vm11, %v543_v39 }
 0x4c9   :  { %645 = vmatmul.mubr.f32.vlgmr.msra.gmra.mrb[2].mxu0 %v542_v40 }
 0x59c   :  { %v646_v45 = vpop.f32.mrb[2].mxu0 }
 0x59d   :  { %v647_v46 = vadd.f32 %v800_v44, %v646_v45  ;;  %v648_v47 = vpop.f32.mrb[3].mxu0 }
 0x59f   :  { %v650_v48 = vmax.f32 %v647_v46, 0.0 }
 0x5a1   :  { %978 = vmatmul.mubr.msk.f32.vlgmr.msra.gmra.mrb[6].mxu1 %vm264_vm3, %v650_v48 }
 0x5a2   :  { %1130 = shalt.err (!%p1127_p4)
}
 0x5a3   :  { %s1131_s5 = scalar_lea.hbm %s1649_s14, 32 }
 0x5a4   :  { %p1132_p5 = scmp.ne.s32.totalorder %s1649_s14, %s1131_s5  ;;  %p1135_p6 = scmp.lt.u32.totalorder %s1131_s5, %s1649_s14 }
 0x5a6   :  { %p1137_p7 = pnand %p1135_p6, %p1132_p5 }
 0x5a8   :  { %1140 = shalt.err (!%p1137_p7)
}
 0x5a9   :  { %765 = dma.vmem_to_hbm [thread:$0]  %s763_s3, 32, %s1649_s14, [#allocation4]  }
 0x5aa   :  { %s1141_s1 = scalar_lea.vmem %s773_s13, 32  ;;  %p1146_p9 = scmp.lt.s32.totalorder %s773_s13, %s773_s13 }
 0x5ab   :  { %p1142_p8 = scmp.ne.s32.totalorder %s773_s13, %s1141_s1  ;;  %p1147_p10 = scmp.lt.s32.totalorder %s1141_s1, %s1141_s1 }
 0x5ad   :  { %p1148_p11 = por %p1147_p10, %p1146_p9 }
 0x5af   :  { %p1149_p12 = pnand %p1148_p11, %p1142_p8 }
 0x5b1   :  { %1152 = shalt.err (!%p1149_p12)
}
 0x5b2   :  { %s1153_s20 = scalar_lea.hbm %s1650_s15, 32 }
 0x5b3   :  { %p1154_p13 = scmp.ne.s32.totalorder %s1650_s15, %s1153_s20  ;;  %p1157_p0 = scmp.lt.u32.totalorder %s1153_s20, %s1650_s15 }
 0x5b5   :  { %p1159_p1 = pnand %p1157_p0, %p1154_p13 }
 0x5b7   :  { %1162 = shalt.err (!%p1159_p1)
}
 0x5b8   :  { %775 = dma.vmem_to_hbm [thread:$0]  %s773_s13, 32, %s1650_s15, [#allocation6]   ;;  %v802_v7 = vld [vmem:[#allocation2] ss:$0 sm:$0xff]  ;;  %vm754_vm12 = vcmask 1024  }
 0x674   :  { %v741_v49 = vpop.f32.mrb[6].mxu1 }
 0x675   :  { %v742_v50 = vadd.f32 %v802_v7, %v741_v49  ;;  %v979_v51 = vpop.f32.mrb[7].mxu1 }
 0x677   :  { %v745_v52 = vand.u32 2147483647, %v742_v50  ;;  %vm751_vm13 = vcmp.ge.f32.partialorder %v742_v50, 0.0 }
 0x679   :  { %v746_v53 = vsub.f32 0.0, %v745_v52 }
 0x67b   :  { %v747_v54 = vmul.f32 1.442695, %v746_v53 }
 0x67d   :  { %1115 = vpow2.f32 %v747_v54 }
 0x687   :  { %v1116_v55 = vpop.eup %1115 }
 0x688   :  { %v749_v56 = vadd.f32 1.0, %v1116_v55 }
 0x68a   :  { %1117 = vrcp.f32 %v749_v56 }
 0x694   :  { %v1118_v57 = vpop.eup %1117 }
 0x695   :  { %v752_v58 = vmul.f32 %v1118_v57, %v1116_v55 }
 0x697   :  { %v753_v59 = vsel %vm751_vm13, %v1118_v57, %v752_v58 }
 0x698   :  { %755 = vst.msk [vmem:[%s1651_s16] sm:$0x3] %vm754_vm12, %v753_v59 }
 0x699   :  { %1163 = dma.done.wait [#allocation4], 32  }
 0x69a   :  { %1164 = vsyncadd [#allocation4], 4294967264 }
 0x69b   :  { %1165 = dma.done.wait [#allocation6], 32  }
 0x69c   :  { %1166 = vsyncadd [#allocation6], 4294967264 }
 0x69d   :  { %786 = vsyncpa [#allocation4], 1 }
 0x69e   :  { %787 = vsyncpa [#allocation6], 1 }

</bundles_post_ra>
